<compile_context>
chip_gen: v7x
topology: tpu7x:2x2x1
jax: 0.10.0
libtpu: 0.0.40
codegen_flags: <defaults>
</compile_context>

<pallas_src>
import functools

import jax
import jax.numpy as jnp
from jax.experimental import pallas as pl
from jax.experimental.pallas import tpu as pltpu

_MiB = 1024 * 1024
MIN_TM = 16        # bf16 sublane packing: row tiles in multiples of 16
TM_MAX = 512       # row-tile upper bound
HEAD_PAD = 128     # dueling-head matmul/output padded to one full lane width


def _round_up(x, m):
    return ((x + m - 1) // m) * m


def _conv_out(s, k, stride, pad):
    return (s + 2 * pad - k) // stride + 1


def _vmem_capacity_bytes():
    # v5e/v6e: 128 MiB, v7x: 64 MiB.  Conservative (v7x) fallback if the query
    # is unavailable on this JAX version.
    try:
        return int(pltpu.get_tpu_info().vmem_capacity_bytes)
    except Exception:  # pragma: no cover - depends on jax version
        return 64 * _MiB


def _plan_tiles(m, in_row_bytes, out_row_bytes, weight_bytes):
    """Pick (tm, m_pad, vmem_limit) for an M-tiled matmul.

    * target >= 2 row tiles so ("parallel",) shards across both v7x cores
    * tm is a multiple of 16 (bf16 sublane packing), capped at TM_MAX
    * double-buffered streamed tiles + (double-buffered) resident weights stay
      inside a per-generation VMEM budget (bigger tiles on 128 MiB chips,
      smaller on v7x's 64 MiB).
    """
    cap = _vmem_capacity_bytes()
    budget = max(min(int(cap * 0.6), 96 * _MiB), 32 * _MiB)
    stream_row = 2 * (in_row_bytes + out_row_bytes)        # 2x: double buffer
    avail = budget - 2 * weight_bytes - 2 * _MiB           # weights + headroom
    tm_fit = MIN_TM
    if avail > stream_row * MIN_TM:
        tm_fit = (avail // stream_row) // MIN_TM * MIN_TM
    tm_split = _round_up(max(1, (m + 1) // 2), MIN_TM)      # aim for >=2 tiles
    tm = int(max(MIN_TM, min(TM_MAX, tm_fit, tm_split)))
    m_pad = _round_up(m, tm)
    vmem_limit = 2 * weight_bytes + tm * stream_row + 4 * _MiB
    vmem_limit = int(min(max(32 * _MiB, vmem_limit), budget))
    return tm, m_pad, vmem_limit


# --------------------------------------------------------------------------
# Pallas kernels
# --------------------------------------------------------------------------
def _mm_bias_kernel(x_ref, w_ref, b_ref, o_ref, *, relu):
    # bf16 x bf16 -> f32 on the MXU; bias/ReLU epilogue in f32.
    y = jnp.dot(x_ref[...], w_ref[...], preferred_element_type=jnp.float32)
    y = y + b_ref[...]
    if relu:
        y = jnp.maximum(y, 0.0)
    o_ref[...] = y.astype(o_ref.dtype)


def _fc_duel_kernel(x_ref, wf_ref, bf_ref, wh_ref, bh_ref, o_ref, *, n_actions):
    # Linear(512)+ReLU fused with the dueling heads; feat never leaves VMEM.
    feat = jnp.dot(x_ref[...], wf_ref[...], preferred_element_type=jnp.float32)
    feat = jnp.maximum(feat + bf_ref[...], 0.0)
    # one (512, 128) matmul: columns [0:A)=advantage, [A]=value, rest zero pad
    heads = jnp.dot(feat.astype(wh_ref.dtype), wh_ref[...],
                    preferred_element_type=jnp.float32) + bh_ref[...]
    value = heads[:, n_actions:n_actions + 1]
    adv_mean = jnp.mean(heads[:, :n_actions], axis=-1, keepdims=True)
    # Lane-dense 128-wide store (unmasked vst); columns >= n_actions hold junk
    # and are sliced off by the wrapper.  Columns < n_actions equal
    # value + (adv - mean(adv)).
    o_ref[...] = (heads + value - adv_mean).astype(o_ref.dtype)


# --------------------------------------------------------------------------
# Pallas call wrappers (M-tiled grid, resident weights, parallel semantics)
# --------------------------------------------------------------------------
def matmul_bias(x, w, b, *, relu=False, out_dtype=jnp.bfloat16):
    m, k = x.shape
    k2, n = w.shape
    assert k == k2
    out_isz = jnp.dtype(out_dtype).itemsize
    weight_bytes = k * n * w.dtype.itemsize + n * 4
    tm, m_pad, vmem_limit = _plan_tiles(
        m, k * x.dtype.itemsize, n * out_isz, weight_bytes)
    if m_pad != m:
        # TODO(synk): fold this row pad into the im2col producer fusion (or
        # mask the ragged tail in-kernel) to avoid the extra HBM copy.
        x = jnp.pad(x, ((0, m_pad - m), (0, 0)))

    kernel = functools.partial(_mm_bias_kernel, relu=relu)
    flops = 2 * m_pad * k * n
    bytes_accessed = (m_pad * k * x.dtype.itemsize + weight_bytes
                      + m_pad * n * out_isz)

    out = pl.pallas_call(
        kernel,
        out_shape=jax.ShapeDtypeStruct((m_pad, n), out_dtype),
        grid_spec=pltpu.PrefetchScalarGridSpec(
            num_scalar_prefetch=0,
            grid=(m_pad // tm,),
            in_specs=[
                pl.BlockSpec((tm, k), lambda i: (i, 0)),   # streamed row tiles
                pl.BlockSpec((k, n), lambda i: (0, 0)),    # resident weight
                pl.BlockSpec((1, n), lambda i: (0, 0)),    # resident bias
            ],
            out_specs=pl.BlockSpec((tm, n), lambda i: (i, 0)),
        ),
        compiler_params=pltpu.CompilerParams(
            dimension_semantics=("parallel",),
            vmem_limit_bytes=vmem_limit,
        ),
        cost_estimate=pl.CostEstimate(
            flops=flops, transcendentals=0, bytes_accessed=bytes_accessed),
    )(x, w, b.reshape(1, n).astype(jnp.float32))
    return out[:m] if m_pad != m else out


def fc_duel(x, wf, bf, wh, bh, n_actions):
    m, k = x.shape
    n_hidden = wf.shape[1]
    n_head = wh.shape[1]           # HEAD_PAD (128), lane-dense
    weight_bytes = ((k * n_hidden + n_hidden * n_head) * wf.dtype.itemsize
                    + (n_hidden + n_head) * 4)
    tm, m_pad, vmem_limit = _plan_tiles(
        m, k * x.dtype.itemsize, n_head * 4, weight_bytes)
    if m_pad != m:
        x = jnp.pad(x, ((0, m_pad - m), (0, 0)))

    flops = 2 * m_pad * k * n_hidden + 2 * m_pad * n_hidden * n_head
    bytes_accessed = (m_pad * k * x.dtype.itemsize + weight_bytes
                      + m_pad * n_head * 4)

    out = pl.pallas_call(
        functools.partial(_fc_duel_kernel, n_actions=n_actions),
        out_shape=jax.ShapeDtypeStruct((m_pad, n_head), jnp.float32),
        grid_spec=pltpu.PrefetchScalarGridSpec(
            num_scalar_prefetch=0,
            grid=(m_pad // tm,),
            in_specs=[
                pl.BlockSpec((tm, k), lambda i: (i, 0)),
                pl.BlockSpec((k, n_hidden), lambda i: (0, 0)),
                pl.BlockSpec((1, n_hidden), lambda i: (0, 0)),
                pl.BlockSpec((n_hidden, n_head), lambda i: (0, 0)),
                pl.BlockSpec((1, n_head), lambda i: (0, 0)),
            ],
            out_specs=pl.BlockSpec((tm, n_head), lambda i: (i, 0)),
        ),
        compiler_params=pltpu.CompilerParams(
            dimension_semantics=("parallel",),
            vmem_limit_bytes=vmem_limit,
        ),
        cost_estimate=pl.CostEstimate(
            flops=flops, transcendentals=0, bytes_accessed=bytes_accessed),
    )(x, wf, bf.reshape(1, -1).astype(jnp.float32),
      wh, bh.reshape(1, -1).astype(jnp.float32))
    return out[:m, :n_actions]


# --------------------------------------------------------------------------
# Conv2d = im2col (bf16, XLA glue) + M-tiled Pallas matmul
# TODO(synk): move patch extraction behind the pallas_call (in-VMEM im2col /
# windowed DMA) so the k^2/stride^2-amplified patches matrix never hits HBM.
# --------------------------------------------------------------------------
def conv2d(x_nhwc, w2d, b, *, k, stride, pad, pad_value, relu):
    n, h, w_, c = x_nhwc.shape
    xp = jnp.pad(
        x_nhwc, ((0, 0), (pad, pad), (pad, pad), (0, 0)),
        constant_values=jnp.array(pad_value, dtype=x_nhwc.dtype))
    hp, wp = h + 2 * pad, w_ + 2 * pad
    oh = (hp - k) // stride + 1
    ow = (wp - k) // stride + 1
    cols = []
    for i in range(k):
        for j in range(k):
            cols.append(
                xp[:, i:i + stride * (oh - 1) + 1:stride,
                      j:j + stride * (ow - 1) + 1:stride, :]
            )
    # (N, OH, OW, k*k, C) -> (N*OH*OW, k*k*C); matches (k, k, C, Cout) weight reshape
    patches = jnp.stack(cols, axis=3).reshape(n * oh * ow, k * k * c)
    out = matmul_bias(patches, w2d, b, relu=relu, out_dtype=jnp.bfloat16)
    return out.reshape(n, oh, ow, -1)


# --------------------------------------------------------------------------
# Parameter preparation (one-time, host-side / trace-time glue)
# --------------------------------------------------------------------------
def prepare_params(raw, input_hw):
    """Fold normalize into conv1, permute wf for NHWC flatten, pack the dueling
    heads into one lane-dense (512, 128) weight, cast MXU operands to bf16."""
    h, w = input_hw
    for (kk, ss, pp) in ((8, 4, 4), (4, 2, 2), (3, 1, 1)):
        h, w = _conv_out(h, kk, ss, pp), _conv_out(w, kk, ss, pp)
    c3 = raw["w3"].shape[-1]
    flat = c3 * h * w
    assert raw["wf"].shape[0] == flat, (raw["wf"].shape, flat)

    def bf16(a):
        return a.astype(jnp.bfloat16)

    # fold (x - 127.5)/127.5 into conv1: conv(w, (x-127.5)/127.5) + b
    #   = conv(w/127.5, x) + (b - sum_{k,k,C} w)   (pad raw value 127.5 == norm 0)
    w1 = raw["w1"].astype(jnp.float32)
    w1_folded = w1 / 127.5
    b1_folded = raw["b1"].astype(jnp.float32) - jnp.sum(w1, axis=(0, 1, 2))

    # permute wf rows: PyTorch flattens NCHW (c*H*W + h*W + w); we flatten NHWC
    wf = raw["wf"].reshape(c3, h, w, -1).transpose(1, 2, 0, 3).reshape(flat, -1)

    # pack advantage + value heads into one lane-dense (512, 128) weight:
    # columns [0:A) = advantage, [A] = value, rest zero padding.
    n_hidden = raw["wa"].shape[0]
    a_dim = raw["wa"].shape[1]
    assert a_dim + 1 <= HEAD_PAD
    wh = jnp.zeros((n_hidden, HEAD_PAD), jnp.float32)
    wh = wh.at[:, :a_dim].set(raw["wa"].astype(jnp.float32))
    wh = wh.at[:, a_dim:a_dim + 1].set(raw["wv"].astype(jnp.float32))
    bh = jnp.zeros((HEAD_PAD,), jnp.float32)
    bh = bh.at[:a_dim].set(raw["ba"].astype(jnp.float32))
    bh = bh.at[a_dim].set(raw["bv"].astype(jnp.float32)[0])

    return {
        "w1": bf16(w1_folded.reshape(-1, w1.shape[-1])),
        "b1": b1_folded,
        "w2": bf16(raw["w2"].reshape(-1, raw["w2"].shape[-1])),
        "b2": raw["b2"].astype(jnp.float32),
        "w3": bf16(raw["w3"].reshape(-1, raw["w3"].shape[-1])),
        "b3": raw["b3"].astype(jnp.float32),
        "wf": bf16(wf),
        "bf": raw["bf"].astype(jnp.float32),
        "wh": bf16(wh),
        "bh": bh,
    }


# --------------------------------------------------------------------------
# Full forward pass (== LazyAtariDuelQModule.forward)
# --------------------------------------------------------------------------
def atari_duel_q(params, state_nchw, n_actions, action=None):
    # raw uint8 NCHW -> bf16 NHWC (exact cast; normalize is folded into conv1)
    # TODO(synk): feed raw uint8 straight into a fused conv1 kernel and cast in
    # VMEM once im2col moves behind the pallas_call boundary.
    x = state_nchw.astype(jnp.bfloat16).transpose(0, 2, 3, 1)
    # conv1 padding value 127.5 == normalized 0 (what PyTorch pads with)
    x = conv2d(x, params["w1"], params["b1"], k=8, stride=4, pad=4,
               pad_value=127.5, relu=True)
    x = conv2d(x, params["w2"], params["b2"], k=4, stride=2, pad=2,
               pad_value=0.0, relu=True)
    x = conv2d(x, params["w3"], params["b3"], k=3, stride=1, pad=1,
               pad_value=0.0, relu=False)
    n = x.shape[0]
    x = x.reshape(n, -1)  # NHWC flatten (contiguous); wf rows were pre-permuted
    q = fc_duel(x, params["wf"], params["bf"], params["wh"], params["bh"],
                n_actions)
    if action is not None:
        # gather_q_values(q, action) — tiny gather, stays as JAX glue
        q = jnp.take_along_axis(q, action[:, None].astype(jnp.int32), axis=1)[:, 0]
    return q


def init_params(key, in_channels, flat_dim, action_dim):
    ks = jax.random.split(key, 12)
    s = 0.05

    def w(k, shape):
        return jax.random.normal(k, shape, jnp.float32) * s

    return {
        "w1": w(ks[0], (8, 8, in_channels, 32)), "b1": w(ks[1], (32,)),
        "w2": w(ks[2], (4, 4, 32, 64)),          "b2": w(ks[3], (64,)),
        "w3": w(ks[4], (3, 3, 64, 64)),          "b3": w(ks[5], (64,)),
        "wf": w(ks[6], (flat_dim, 512)),         "bf": w(ks[7], (512,)),
        "wa": w(ks[8], (512, action_dim)),       "ba": w(ks[9], (action_dim,)),
        "wv": w(ks[10], (512, 1)),               "bv": w(ks[11], (1,)),
    }


if __name__ == "__main__":
    key = jax.random.PRNGKey(0)
    k_state, k_act, k_par = jax.random.split(key, 3)

    batch, in_channels, spatial, action_dim = 2, 4, 16, 6
    # 16x16 input: conv1 -> 5x5, conv2 -> 3x3, conv3 -> 3x3  => flat = 64*3*3 = 576
    flat_dim = 64 * 3 * 3

    state = jax.random.randint(
        k_state, (batch, in_channels, spatial, spatial), 0, 256, dtype=jnp.int32
    ).astype(jnp.uint8)
    action = jax.random.randint(k_act, (batch,), 0, action_dim, dtype=jnp.int32)

    raw_params = init_params(k_par, in_channels, flat_dim, action_dim)
    params = prepare_params(raw_params, (spatial, spatial))

    fwd = jax.jit(lambda p, s: atari_duel_q(p, s, action_dim))
    fwd_gather = jax.jit(lambda p, s, a: atari_duel_q(p, s, action_dim, a))

    q_all = jax.block_until_ready(fwd(params, state))
    q_sel = jax.block_until_ready(fwd_gather(params, state, action))

    assert q_all.shape == (batch, action_dim) and q_all.dtype == jnp.float32
    assert q_sel.shape == (batch,) and q_sel.dtype == jnp.float32
    assert bool(jnp.all(jnp.isfinite(q_all)))
    # consistency of gather path with full Q output
    assert bool(
        jnp.allclose(q_sel, jnp.take_along_axis(q_all, action[:, None], axis=1)[:, 0])
    )

    print("KERNEL_OK")
</pallas_src>

<mosaic_0001>
module attributes {stable_mosaic.version = 11 : i64} {
  func.func @_mm_bias_kernel(%arg0: i32, %arg1: memref<32x256xbf16, #tpu.memory_space<vmem>>, %arg2: memref<256x32xbf16, #tpu.memory_space<vmem>>, %arg3: memref<1x32xf32, #tpu.memory_space<vmem>>, %arg4: memref<32x32xbf16, #tpu.memory_space<vmem>>) attributes {dimension_semantics = [#tpu.dimension_semantics<parallel>], iteration_bounds = array<i64: 2>, scalar_prefetch = 0 : i64, scratch_operands = 0 : i64, tpu.core_type = #tpu.core_type<tc>, window_params = [{transform_indices = @transform_0, window_bounds = array<i64: 32, 256>}, {pipeline_mode = #tpu.pipeline_mode<synchronous>, transform_indices = @transform_1, window_bounds = array<i64: 256, 32>}, {pipeline_mode = #tpu.pipeline_mode<synchronous>, transform_indices = @transform_2, window_bounds = array<i64: 1, 32>}, {transform_indices = @transform_3, window_bounds = array<i64: 32, 32>}]} {
    %c0 = arith.constant 0 : index
    %c0_0 = arith.constant 0 : index
    %0 = vector.load %arg1[%c0, %c0_0] : memref<32x256xbf16, #tpu.memory_space<vmem>>, vector<32x256xbf16>
    %c0_1 = arith.constant 0 : index
    %c0_2 = arith.constant 0 : index
    %1 = vector.load %arg2[%c0_1, %c0_2] : memref<256x32xbf16, #tpu.memory_space<vmem>>, vector<256x32xbf16>
    %cst = arith.constant dense<0.000000e+00> : vector<32x32xf32>
    %2 = tpu.matmul %0, %1, %cst {dimension_numbers = #tpu.dot_dimension_numbers<[1], [0], [0], [1], [0, 0, 1, 1], [], []>} : vector<32x256xbf16>, vector<256x32xbf16>, vector<32x32xf32> -> vector<32x32xf32>
    %c0_3 = arith.constant 0 : index
    %c0_4 = arith.constant 0 : index
    %3 = vector.load %arg3[%c0_3, %c0_4] : memref<1x32xf32, #tpu.memory_space<vmem>>, vector<1x32xf32>
    %4 = vector.broadcast %3 : vector<1x32xf32> to vector<32x32xf32>
    %5 = arith.addf %2, %4 : vector<32x32xf32>
    %cst_5 = arith.constant 0.000000e+00 : f32
    %6 = vector.broadcast %cst_5 : f32 to vector<32x32xf32>
    %7 = arith.maximumf %5, %6 : vector<32x32xf32>
    %8 = arith.truncf %7 : vector<32x32xf32> to vector<32x32xbf16>
    %c0_6 = arith.constant 0 : index
    %c0_7 = arith.constant 0 : index
    %9 = vector.load %arg4[%c0_6, %c0_7] : memref<32x32xbf16, #tpu.memory_space<vmem>>, vector<32x32xbf16>
    tpu.vector_store %arg4[%c0_6, %c0_7], %8 {strides = array<i32>} : memref<32x32xbf16, #tpu.memory_space<vmem>>, vector<32x32xbf16>,
    return
  }
  func.func @transform_0(%arg0: i32) -> (i32, i32) {
    %c0_i32 = arith.constant 0 : i32
    %c0_i32_0 = arith.constant 0 : i32
    return %arg0, %c0_i32 : i32, i32
  }
  func.func @transform_1(%arg0: i32) -> (i32, i32) {
    %c0_i32 = arith.constant 0 : i32
    %c0_i32_0 = arith.constant 0 : i32
    %c0_i32_1 = arith.constant 0 : i32
    return %c0_i32, %c0_i32_0 : i32, i32
  }
  func.func @transform_2(%arg0: i32) -> (i32, i32) {
    %c0_i32 = arith.constant 0 : i32
    %c0_i32_0 = arith.constant 0 : i32
    %c0_i32_1 = arith.constant 0 : i32
    return %c0_i32, %c0_i32_0 : i32, i32
  }
  func.func @transform_3(%arg0: i32) -> (i32, i32) {
    %c0_i32 = arith.constant 0 : i32
    %c0_i32_0 = arith.constant 0 : i32
    return %arg0, %c0_i32 : i32, i32
  }
}

module attributes {stable_mosaic.version = 11 : i64} {
  func.func @_mm_bias_kernel(%arg0: i32, %arg1: memref<16x512xbf16, #tpu.memory_space<vmem>>, %arg2: memref<512x64xbf16, #tpu.memory_space<vmem>>, %arg3: memref<1x64xf32, #tpu.memory_space<vmem>>, %arg4: memref<16x64xbf16, #tpu.memory_space<vmem>>) attributes {dimension_semantics = [#tpu.dimension_semantics<parallel>], iteration_bounds = array<i64: 2>, scalar_prefetch = 0 : i64, scratch_operands = 0 : i64, tpu.core_type = #tpu.core_type<tc>, window_params = [{transform_indices = @transform_0, window_bounds = array<i64: 16, 512>}, {pipeline_mode = #tpu.pipeline_mode<synchronous>, transform_indices = @transform_1, window_bounds = array<i64: 512, 64>}, {pipeline_mode = #tpu.pipeline_mode<synchronous>, transform_indices = @transform_2, window_bounds = array<i64: 1, 64>}, {transform_indices = @transform_3, window_bounds = array<i64: 16, 64>}]} {
    %c0 = arith.constant 0 : index
    %c0_0 = arith.constant 0 : index
    %0 = vector.load %arg1[%c0, %c0_0] : memref<16x512xbf16, #tpu.memory_space<vmem>>, vector<16x512xbf16>
    %c0_1 = arith.constant 0 : index
    %c0_2 = arith.constant 0 : index
    %1 = vector.load %arg2[%c0_1, %c0_2] : memref<512x64xbf16, #tpu.memory_space<vmem>>, vector<512x64xbf16>
    %cst = arith.constant dense<0.000000e+00> : vector<16x64xf32>
    %2 = tpu.matmul %0, %1, %cst {dimension_numbers = #tpu.dot_dimension_numbers<[1], [0], [0], [1], [0, 0, 1, 1], [], []>} : vector<16x512xbf16>, vector<512x64xbf16>, vector<16x64xf32> -> vector<16x64xf32>
    %c0_3 = arith.constant 0 : index
    %c0_4 = arith.constant 0 : index
    %3 = vector.load %arg3[%c0_3, %c0_4] : memref<1x64xf32, #tpu.memory_space<vmem>>, vector<1x64xf32>
    %4 = vector.broadcast %3 : vector<1x64xf32> to vector<16x64xf32>
    %5 = arith.addf %2, %4 : vector<16x64xf32>
    %cst_5 = arith.constant 0.000000e+00 : f32
    %6 = vector.broadcast %cst_5 : f32 to vector<16x64xf32>
    %7 = arith.maximumf %5, %6 : vector<16x64xf32>
    %8 = arith.truncf %7 : vector<16x64xf32> to vector<16x64xbf16>
    %c0_6 = arith.constant 0 : index
    %c0_7 = arith.constant 0 : index
    %9 = vector.load %arg4[%c0_6, %c0_7] : memref<16x64xbf16, #tpu.memory_space<vmem>>, vector<16x64xbf16>
    tpu.vector_store %arg4[%c0_6, %c0_7], %8 {strides = array<i32>} : memref<16x64xbf16, #tpu.memory_space<vmem>>, vector<16x64xbf16>,
    return
  }
  func.func @transform_0(%arg0: i32) -> (i32, i32) {
    %c0_i32 = arith.constant 0 : i32
    %c0_i32_0 = arith.constant 0 : i32
    return %arg0, %c0_i32 : i32, i32
  }
  func.func @transform_1(%arg0: i32) -> (i32, i32) {
    %c0_i32 = arith.constant 0 : i32
    %c0_i32_0 = arith.constant 0 : i32
    %c0_i32_1 = arith.constant 0 : i32
    return %c0_i32, %c0_i32_0 : i32, i32
  }
  func.func @transform_2(%arg0: i32) -> (i32, i32) {
    %c0_i32 = arith.constant 0 : i32
    %c0_i32_0 = arith.constant 0 : i32
    %c0_i32_1 = arith.constant 0 : i32
    return %c0_i32, %c0_i32_0 : i32, i32
  }
  func.func @transform_3(%arg0: i32) -> (i32, i32) {
    %c0_i32 = arith.constant 0 : i32
    %c0_i32_0 = arith.constant 0 : i32
    return %arg0, %c0_i32 : i32, i32
  }
}

module attributes {stable_mosaic.version = 11 : i64} {
  func.func @_mm_bias_kernel(%arg0: i32, %arg1: memref<16x576xbf16, #tpu.memory_space<vmem>>, %arg2: memref<576x64xbf16, #tpu.memory_space<vmem>>, %arg3: memref<1x64xf32, #tpu.memory_space<vmem>>, %arg4: memref<16x64xbf16, #tpu.memory_space<vmem>>) attributes {dimension_semantics = [#tpu.dimension_semantics<parallel>], iteration_bounds = array<i64: 2>, scalar_prefetch = 0 : i64, scratch_operands = 0 : i64, tpu.core_type = #tpu.core_type<tc>, window_params = [{transform_indices = @transform_0, window_bounds = array<i64: 16, 576>}, {pipeline_mode = #tpu.pipeline_mode<synchronous>, transform_indices = @transform_1, window_bounds = array<i64: 576, 64>}, {pipeline_mode = #tpu.pipeline_mode<synchronous>, transform_indices = @transform_2, window_bounds = array<i64: 1, 64>}, {transform_indices = @transform_3, window_bounds = array<i64: 16, 64>}]} {
    %c0 = arith.constant 0 : index
    %c0_0 = arith.constant 0 : index
    %0 = vector.load %arg1[%c0, %c0_0] : memref<16x576xbf16, #tpu.memory_space<vmem>>, vector<16x576xbf16>
    %c0_1 = arith.constant 0 : index
    %c0_2 = arith.constant 0 : index
    %1 = vector.load %arg2[%c0_1, %c0_2] : memref<576x64xbf16, #tpu.memory_space<vmem>>, vector<576x64xbf16>
    %cst = arith.constant dense<0.000000e+00> : vector<16x64xf32>
    %2 = tpu.matmul %0, %1, %cst {dimension_numbers = #tpu.dot_dimension_numbers<[1], [0], [0], [1], [0, 0, 1, 1], [], []>} : vector<16x576xbf16>, vector<576x64xbf16>, vector<16x64xf32> -> vector<16x64xf32>
    %c0_3 = arith.constant 0 : index
    %c0_4 = arith.constant 0 : index
    %3 = vector.load %arg3[%c0_3, %c0_4] : memref<1x64xf32, #tpu.memory_space<vmem>>, vector<1x64xf32>
    %4 = vector.broadcast %3 : vector<1x64xf32> to vector<16x64xf32>
    %5 = arith.addf %2, %4 : vector<16x64xf32>
    %6 = arith.truncf %5 : vector<16x64xf32> to vector<16x64xbf16>
    %c0_5 = arith.constant 0 : index
    %c0_6 = arith.constant 0 : index
    %7 = vector.load %arg4[%c0_5, %c0_6] : memref<16x64xbf16, #tpu.memory_space<vmem>>, vector<16x64xbf16>
    tpu.vector_store %arg4[%c0_5, %c0_6], %6 {strides = array<i32>} : memref<16x64xbf16, #tpu.memory_space<vmem>>, vector<16x64xbf16>,
    return
  }
  func.func @transform_0(%arg0: i32) -> (i32, i32) {
    %c0_i32 = arith.constant 0 : i32
    %c0_i32_0 = arith.constant 0 : i32
    return %arg0, %c0_i32 : i32, i32
  }
  func.func @transform_1(%arg0: i32) -> (i32, i32) {
    %c0_i32 = arith.constant 0 : i32
    %c0_i32_0 = arith.constant 0 : i32
    %c0_i32_1 = arith.constant 0 : i32
    return %c0_i32, %c0_i32_0 : i32, i32
  }
  func.func @transform_2(%arg0: i32) -> (i32, i32) {
    %c0_i32 = arith.constant 0 : i32
    %c0_i32_0 = arith.constant 0 : i32
    %c0_i32_1 = arith.constant 0 : i32
    return %c0_i32, %c0_i32_0 : i32, i32
  }
  func.func @transform_3(%arg0: i32) -> (i32, i32) {
    %c0_i32 = arith.constant 0 : i32
    %c0_i32_0 = arith.constant 0 : i32
    return %arg0, %c0_i32 : i32, i32
  }
}

module attributes {stable_mosaic.version = 11 : i64} {
  func.func @_fc_duel_kernel(%arg0: i32, %arg1: memref<16x576xbf16, #tpu.memory_space<vmem>>, %arg2: memref<576x512xbf16, #tpu.memory_space<vmem>>, %arg3: memref<1x512xf32, #tpu.memory_space<vmem>>, %arg4: memref<512x128xbf16, #tpu.memory_space<vmem>>, %arg5: memref<1x128xf32, #tpu.memory_space<vmem>>, %arg6: memref<16x128xf32, #tpu.memory_space<vmem>>) attributes {dimension_semantics = [#tpu.dimension_semantics<parallel>], iteration_bounds = array<i64: 1>, scalar_prefetch = 0 : i64, scratch_operands = 0 : i64, tpu.core_type = #tpu.core_type<tc>, window_params = [{transform_indices = @transform_0, window_bounds = array<i64: 16, 576>}, {pipeline_mode = #tpu.pipeline_mode<synchronous>, transform_indices = @transform_1, window_bounds = array<i64: 576, 512>}, {pipeline_mode = #tpu.pipeline_mode<synchronous>, transform_indices = @transform_2, window_bounds = array<i64: 1, 512>}, {pipeline_mode = #tpu.pipeline_mode<synchronous>, transform_indices = @transform_3, window_bounds = array<i64: 512, 128>}, {pipeline_mode = #tpu.pipeline_mode<synchronous>, transform_indices = @transform_4, window_bounds = array<i64: 1, 128>}, {transform_indices = @transform_5, window_bounds = array<i64: 16, 128>}]} {
    %c0 = arith.constant 0 : index
    %c0_0 = arith.constant 0 : index
    %0 = vector.load %arg1[%c0, %c0_0] : memref<16x576xbf16, #tpu.memory_space<vmem>>, vector<16x576xbf16>
    %c0_1 = arith.constant 0 : index
    %c0_2 = arith.constant 0 : index
    %1 = vector.load %arg2[%c0_1, %c0_2] : memref<576x512xbf16, #tpu.memory_space<vmem>>, vector<576x512xbf16>
    %cst = arith.constant dense<0.000000e+00> : vector<16x512xf32>
    %2 = tpu.matmul %0, %1, %cst {dimension_numbers = #tpu.dot_dimension_numbers<[1], [0], [0], [1], [0, 0, 1, 1], [], []>} : vector<16x576xbf16>, vector<576x512xbf16>, vector<16x512xf32> -> vector<16x512xf32>
    %c0_3 = arith.constant 0 : index
    %c0_4 = arith.constant 0 : index
    %3 = vector.load %arg3[%c0_3, %c0_4] : memref<1x512xf32, #tpu.memory_space<vmem>>, vector<1x512xf32>
    %4 = vector.broadcast %3 : vector<1x512xf32> to vector<16x512xf32>
    %5 = arith.addf %2, %4 : vector<16x512xf32>
    %cst_5 = arith.constant 0.000000e+00 : f32
    %6 = vector.broadcast %cst_5 : f32 to vector<16x512xf32>
    %7 = arith.maximumf %5, %6 : vector<16x512xf32>
    %8 = arith.truncf %7 : vector<16x512xf32> to vector<16x512xbf16>
    %c0_6 = arith.constant 0 : index
    %c0_7 = arith.constant 0 : index
    %9 = vector.load %arg4[%c0_6, %c0_7] : memref<512x128xbf16, #tpu.memory_space<vmem>>, vector<512x128xbf16>
    %cst_8 = arith.constant dense<0.000000e+00> : vector<16x128xf32>
    %10 = tpu.matmul %8, %9, %cst_8 {dimension_numbers = #tpu.dot_dimension_numbers<[1], [0], [0], [1], [0, 0, 1, 1], [], []>} : vector<16x512xbf16>, vector<512x128xbf16>, vector<16x128xf32> -> vector<16x128xf32>
    %c0_9 = arith.constant 0 : index
    %c0_10 = arith.constant 0 : index
    %11 = vector.load %arg5[%c0_9, %c0_10] : memref<1x128xf32, #tpu.memory_space<vmem>>, vector<1x128xf32>
    %12 = vector.broadcast %11 : vector<1x128xf32> to vector<16x128xf32>
    %13 = arith.addf %10, %12 : vector<16x128xf32>
    %14 = vector.extract_strided_slice %13 {offsets = [0, 6], sizes = [16, 1], strides = [1, 1]} : vector<16x128xf32> to vector<16x1xf32>
    %15 = vector.extract_strided_slice %13 {offsets = [0, 0], sizes = [16, 6], strides = [1, 1]} : vector<16x128xf32> to vector<16x6xf32>
    %cst_11 = arith.constant dense<0.000000e+00> : vector<16xf32>
    %16 = vector.multi_reduction <add>, %15, %cst_11 [1] : vector<16x6xf32> to vector<16xf32>
    %17 = vector.shape_cast %16 : vector<16xf32> to vector<16x1xf32>
    %cst_12 = arith.constant 6.000000e+00 : f32
    %18 = vector.broadcast %cst_12 : f32 to vector<16x1xf32>
    %19 = arith.divf %17, %18 : vector<16x1xf32>
    %20 = vector.broadcast %14 : vector<16x1xf32> to vector<16x128xf32>
    %21 = arith.addf %13, %20 : vector<16x128xf32>
    %22 = vector.broadcast %19 : vector<16x1xf32> to vector<16x128xf32>
    %23 = arith.subf %21, %22 : vector<16x128xf32>
    %c0_13 = arith.constant 0 : index
    %c0_14 = arith.constant 0 : index
    %24 = vector.load %arg6[%c0_13, %c0_14] : memref<16x128xf32, #tpu.memory_space<vmem>>, vector<16x128xf32>
    tpu.vector_store %arg6[%c0_13, %c0_14], %23 {strides = array<i32>} : memref<16x128xf32, #tpu.memory_space<vmem>>, vector<16x128xf32>,
    return
  }
  func.func @transform_0(%arg0: i32) -> (i32, i32) {
    %c0_i32 = arith.constant 0 : i32
    %c0_i32_0 = arith.constant 0 : i32
    return %arg0, %c0_i32 : i32, i32
  }
  func.func @transform_1(%arg0: i32) -> (i32, i32) {
    %c0_i32 = arith.constant 0 : i32
    %c0_i32_0 = arith.constant 0 : i32
    %c0_i32_1 = arith.constant 0 : i32
    return %c0_i32, %c0_i32_0 : i32, i32
  }
  func.func @transform_2(%arg0: i32) -> (i32, i32) {
    %c0_i32 = arith.constant 0 : i32
    %c0_i32_0 = arith.constant 0 : i32
    %c0_i32_1 = arith.constant 0 : i32
    return %c0_i32, %c0_i32_0 : i32, i32
  }
  func.func @transform_3(%arg0: i32) -> (i32, i32) {
    %c0_i32 = arith.constant 0 : i32
    %c0_i32_0 = arith.constant 0 : i32
    %c0_i32_1 = arith.constant 0 : i32
    return %c0_i32, %c0_i32_0 : i32, i32
  }
  func.func @transform_4(%arg0: i32) -> (i32, i32) {
    %c0_i32 = arith.constant 0 : i32
    %c0_i32_0 = arith.constant 0 : i32
    %c0_i32_1 = arith.constant 0 : i32
    return %c0_i32, %c0_i32_0 : i32, i32
  }
  func.func @transform_5(%arg0: i32) -> (i32, i32) {
    %c0_i32 = arith.constant 0 : i32
    %c0_i32_0 = arith.constant 0 : i32
    return %arg0, %c0_i32 : i32, i32
  }
}

</mosaic_0001>

<bundles_post_ra>
// kernel: _lambda_.4
= control target key start
LH: loop header
LB: loop body
LE: loop exit
PB: predicated region body
PF: predicated region fallthrough
CT: control target
= control target key end

     0   :  { %s611_s12 = smov 0   ;;  %s683_s0 = inlined_call_operand.vmem [shape: bf16[64,256], index: 0, kind: input, shape index: {}]   ;;  %s684_s1 = inlined_call_operand.vmem [shape: bf16[256,32], index: 1, kind: input, shape index: {}]   ;;  %s685_s2 = inlined_call_operand.vmem [shape: f32[1,32], index: 2, kind: input, shape index: {}]   ;;  %s686_s3 = inlined_call_operand.vmem [shape: bf16[64,32], index: 3, kind: output, shape index: {}]  }
   0x1 LB: > { %s467_s13 = sadd.s32 4294967295, %s589_s12   ;;  %p471_p0 = scmp.ge.s32.totalorder %s589_s12, 1  ;;  %s589_s12 = sphi %s611_s12, %s13_s12  }
   0x2   : > { %p139_p1 = scmp.lt.s32.totalorder %s589_s12, 3 }
   0x4   : > { %p140_p2 = pnand %p471_p0, %p139_p1 }
   0x5   : > { %v561_v0 = vld [vmem:[%s684_s1 + $0x40] sm:$0xff] (!%p140_p2)   ;;  %s472_s16 = sshll.u32 (!%p140_p2), %s467_s13, 2  ;;  %v563_v2 = vld [vmem:[%s684_s1 + $0x48] sm:$0xff] (!%p140_p2)   ;;  %v565_v4 = vld [vmem:[%s684_s1 + $0x50] sm:$0xff] (!%p140_p2)   ;;  %vm406_vm0 = vcmask (!%p140_p2), 257024  }
   0x6   : > { %143 = sbr.rel (%p140_p2) target bundleno = 262 (0x106), region = 32  ;;  %v562_v1 = vld [vmem:[%s684_s1] sm:$0xff] (!%p140_p2)   ;;  %509 = vmatprep.subr.bf16.mxu0 (!%p140_p2), %v561_v0  ;;  %537 = vmatprep.subr.bf16.mxu1 (!%p140_p2), %v561_v0  ;;  %v564_v3 = vld [vmem:[%s684_s1 + $0x8] sm:$0xff] (!%p140_p2)   ;;  %p165_p3 = scmp.lt.s32.totalorder (!%p140_p2), %s472_s16, 7  ;;  %v566_v5 = vld [vmem:[%s684_s1 + $0x10] sm:$0xff] (!%p140_p2)  }
   0x7   : > { %510 = vmatpush3.bf16.msra.mxu0 (!%p140_p2), %v562_v1  ;;  %545 = vmatpush3.bf16.msra.mxu1 (!%p140_p2), %v562_v1  ;;  %v567_v6 = vld [vmem:[%s684_s1 + $0x58] sm:$0xff] (!%p140_p2)   ;;  %v569_v8 = vld [vmem:[%s684_s1 + $0x60] sm:$0xff] (!%p140_p2)   ;;  %v571_v10 = vld [vmem:[%s684_s1 + $0x68] sm:$0xff] (!%p140_p2)  }
   0x8   : > { %511 = vmatprep.subr.bf16.mxu0 (!%p140_p2), %v563_v2  ;;  %538 = vmatprep.subr.bf16.mxu1 (!%p140_p2), %v563_v2  ;;  %v568_v7 = vld [vmem:[%s684_s1 + $0x18] sm:$0xff] (!%p140_p2)   ;;  %v570_v9 = vld [vmem:[%s684_s1 + $0x20] sm:$0xff] (!%p140_p2)   ;;  %v572_v13 = vld [vmem:[%s684_s1 + $0x28] sm:$0xff] (!%p140_p2)  }
   0x9   : > { %v573_v14 = vld [vmem:[%s684_s1 + $0x70] sm:$0xff] (!%p140_p2)   ;;  %v575_v16 = vld [vmem:[%s684_s1 + $0x78] sm:$0xff] (!%p140_p2)   ;;  %v477_v22 = vld [vmem:[%s685_s2] ss:$0 sm:$0xff] (!%p140_p2) }
   0xa   : > { %v574_v15 = vld [vmem:[%s684_s1 + $0x30] sm:$0xff] (!%p140_p2)   ;;  %v576_v17 = vld [vmem:[%s684_s1 + $0x38] sm:$0xff] (!%p140_p2)  }
   0xb   : > { %512 = vmatpush3.bf16.msra.mxu0 (!%p140_p2), %v564_v3  ;;  %546 = vmatpush3.bf16.msra.mxu1 (!%p140_p2), %v564_v3 }
   0xc   : > { %513 = vmatprep.subr.bf16.mxu0 (!%p140_p2), %v565_v4  ;;  %539 = vmatprep.subr.bf16.mxu1 (!%p140_p2), %v565_v4 }
   0xd   : > { %s688_s16 = smov (!%p165_p3, %s472_s16), 7 }
   0xe   : > { %s504_s4 = sshll.u32 %s688_s16, 3  ;;  %s476_s28 = sshll.u32 %s688_s16, 2 }
   0xf   : > { %514 = vmatpush3.bf16.msra.mxu0 %v566_v5  ;;  %547 = vmatpush3.bf16.msra.mxu1 %v566_v5  ;;  %s169_s9 = scalar_lea.vmem %s683_s0, %s504_s4  ;;  %s175_s4 = scalar_lea.vmem %s686_s3, %s476_s28 }
  0x10   : > { %515 = vmatprep.subr.bf16.mxu0 %v567_v6  ;;  %540 = vmatprep.subr.bf16.mxu1 %v567_v6  ;;  %v579_v11 = vld [vmem:[%s169_s9 + $0x4] ss:$8 sps:$4 sm:$0xff]   ;;  %v582_v12 = vld [vmem:[%s169_s9 + $0x14] ss:$8 sps:$4 sm:$0xff]   ;;  %v577_v18 = vld [vmem:[%s169_s9] ss:$8 sps:$4 sm:$0xff]  }
  0x11   : > { %369 = vmatprep.mubr.bf16.mxu0 %v579_v11  ;;  %377 = vmatprep.mubr.bf16.mxu1 %v582_v12  ;;  %v580_v19 = vld [vmem:[%s169_s9 + $0x10] ss:$8 sps:$4 sm:$0xff]  }
  0x13   : > { %516 = vmatpush3.bf16.msra.mxu0 %v568_v7  ;;  %548 = vmatpush3.bf16.msra.mxu1 %v568_v7 }
  0x14   : > { %517 = vmatprep.subr.bf16.mxu0 %v569_v8  ;;  %541 = vmatprep.subr.bf16.mxu1 %v569_v8 }
  0x17   : > { %518 = vmatpush3.bf16.msra.mxu0 %v570_v9  ;;  %549 = vmatpush3.bf16.msra.mxu1 %v570_v9 }
  0x18   : > { %519 = vmatprep.subr.bf16.mxu0 %v571_v10  ;;  %542 = vmatprep.subr.bf16.mxu1 %v571_v10 }
  0x1b   : > { %520 = vmatpush3.bf16.msra.mxu0 %v572_v13  ;;  %550 = vmatpush3.bf16.msra.mxu1 %v572_v13 }
  0x1c   : > { %521 = vmatprep.subr.bf16.mxu0 %v573_v14  ;;  %543 = vmatprep.subr.bf16.mxu1 %v573_v14 }
  0x1f   : > { %522 = vmatpush3.bf16.msra.mxu0 %v574_v15  ;;  %551 = vmatpush3.bf16.msra.mxu1 %v574_v15 }
  0x20   : > { %523 = vmatprep.subr.bf16.mxu0 %v575_v16  ;;  %544 = vmatprep.subr.bf16.mxu1 %v575_v16 }
  0x23   : > { %524 = vmatpush3.bf16.msra.mxu0 %v576_v17  ;;  %552 = vmatpush3.bf16.msra.mxu1 %v576_v17 }
  0x26   : > { %370 = vmatmul.mubr.bf16.vlgmr.msra.gmra.mrb[0].mxu0 %v577_v18  ;;  %378 = vmatmul.mubr.bf16.vlgmr.msra.gmra.mrb[0].mxu1 %v580_v19 }
  0xf9   : > { %v525_v20 = vpop.f32.mrb[0].mxu0  ;;  %v531_v21 = vpop.f32.mrb[0].mxu1 }
  0xfa   : > { %v526_v23 = vpop.f32.mrb[1].mxu0  ;;  %v532_v24 = vpop.f32.mrb[1].mxu1 }
  0xfb   : > { %v527_v25 = vadd.f32 %v526_v23, %v525_v20  ;;  %v533_v26 = vadd.f32 %v532_v24, %v531_v21  ;;  %v528_v27 = vpop.f32.mrb[2].mxu0  ;;  %v534_v28 = vpop.f32.mrb[2].mxu1 }
  0xfc   : > { %v529_v29 = vpop.f32.mrb[3].mxu0  ;;  %v535_v30 = vpop.f32.mrb[3].mxu1 }
  0xfd   : > { %v372_v31 = vadd.f32 %v527_v25, %v477_v22  ;;  %v380_v32 = vadd.f32 %v533_v26, %v477_v22  ;;  %v530_v33 = vadd.f32 %v529_v29, %v528_v27  ;;  %v536_v34 = vadd.f32 %v535_v30, %v534_v28 }
  0xff   : > { %v386_v35 = vmax.f32 %v372_v31, 0.0  ;;  %v375_v36 = vadd.f32 %v530_v33, %v477_v22  ;;  %v383_v37 = vadd.f32 %v536_v34, %v477_v22  ;;  %v388_v38 = vmax.f32 %v380_v32, 0.0 }
 0x101   : > { %v505_v39 = vpack.c.bf16 %v386_v35, %v386_v35  ;;  %v387_v40 = vmax.f32 %v375_v36, 0.0  ;;  %v389_v41 = vmax.f32 %v383_v37, 0.0  ;;  %v507_v43 = vpack.c.bf16 %v388_v38, %v388_v38 }
 0x103   : > { %407 = vst.msk [vmem:[%s175_s4] sm:$0xf] %vm406_vm0, %v505_v39  ;;  %v506_v42 = vpack.c.bf16 %v387_v40, %v387_v40  ;;  %v508_v44 = vpack.c.bf16 %v389_v41, %v389_v41  ;;  %409 = vst.msk [vmem:[%s175_s4 + $0x8] sm:$0xf] %vm406_vm0, %v507_v43 }
 0x105   : > { %408 = vst.msk [vmem:[%s175_s4 + $0x4] sm:$0xf] %vm406_vm0, %v506_v42  ;;  %410 = vst.msk [vmem:[%s175_s4 + $0xc] sm:$0xf] %vm406_vm0, %v508_v44 }
 0x106 PF: > { %s13_s12 = sadd.s32 1, %s589_s12  }
 0x107   : > { %p10_p4 = scmp.ge.s32.totalorder %s13_s12, 4  }
 0x109   :  { %12 = sbr.rel (!%p10_p4) target bundleno = 1 (0x1), region = 62 }

// kernel: _lambda_.5
= control target key start
LH: loop header
LB: loop body
LE: loop exit
PB: predicated region body
PF: predicated region fallthrough
CT: control target
= control target key end

     0   :  { %s788_s12 = smov 0   ;;  %s910_s0 = inlined_call_operand.vmem [shape: bf16[32,512], index: 0, kind: input, shape index: {}]   ;;  %s911_s1 = inlined_call_operand.vmem [shape: bf16[512,64], index: 1, kind: input, shape index: {}]   ;;  %s912_s2 = inlined_call_operand.vmem [shape: f32[1,64], index: 2, kind: input, shape index: {}]   ;;  %s913_s3 = inlined_call_operand.vmem [shape: bf16[32,64], index: 3, kind: output, shape index: {}]  }
   0x1 LB: > { %s616_s13 = sadd.s32 4294967295, %s766_s12   ;;  %p620_p0 = scmp.ge.s32.totalorder %s766_s12, 1  ;;  %s766_s12 = sphi %s788_s12, %s13_s12  }
   0x2   : > { %p139_p1 = scmp.lt.s32.totalorder %s766_s12, 3 }
   0x4   : > { %p140_p2 = pnand %p620_p0, %p139_p1 }
   0x5   : > { %v722_v0 = vld [vmem:[%s911_s1 + $0x40] sm:$0xff] (!%p140_p2)   ;;  %v726_v4 = vld [vmem:[%s911_s1 + $0x48] sm:$0xff] (!%p140_p2)   ;;  %v730_v8 = vld [vmem:[%s911_s1 + $0x50] sm:$0xff] (!%p140_p2)   ;;  %s621_s21 = sshll.u32 (!%p140_p2), %s616_s13, 1  ;;  %vm557_vm0 = vcmask (!%p140_p2), 519168  }
   0x6   : > { %143 = sbr.rel (%p140_p2) target bundleno = 265 (0x109), region = 32  ;;  %v723_v1 = vld [vmem:[%s911_s1 + $0xc0] sm:$0xff] (!%p140_p2)   ;;  %670 = vmatprep.subr.bf16.mxu0 (!%p140_p2), %v722_v0  ;;  %v727_v5 = vld [vmem:[%s911_s1 + $0xc8] sm:$0xff] (!%p140_p2)   ;;  %v731_v9 = vld [vmem:[%s911_s1 + $0xd0] sm:$0xff] (!%p140_p2)   ;;  %p165_p3 = scmp.lt.s32.totalorder (!%p140_p2), %s621_s21, 3 }
   0x7   : > { %v724_v2 = vld [vmem:[%s911_s1] sm:$0xff] (!%p140_p2)   ;;  %692 = vmatprep.subr.bf16.mxu1 (!%p140_p2), %v723_v1  ;;  %v728_v6 = vld [vmem:[%s911_s1 + $0x8] sm:$0xff] (!%p140_p2)   ;;  %v732_v10 = vld [vmem:[%s911_s1 + $0x10] sm:$0xff] (!%p140_p2)  }
   0x8   : > { %v725_v3 = vld [vmem:[%s911_s1 + $0x80] sm:$0xff] (!%p140_p2)   ;;  %671 = vmatpush3.bf16.msra.mxu0 (!%p140_p2), %v724_v2  ;;  %v729_v7 = vld [vmem:[%s911_s1 + $0x88] sm:$0xff] (!%p140_p2)   ;;  %v733_v11 = vld [vmem:[%s911_s1 + $0x90] sm:$0xff] (!%p140_p2)  }
   0x9   : > { %693 = vmatpush3.bf16.msra.mxu1 (!%p140_p2), %v725_v3  ;;  %672 = vmatprep.subr.bf16.mxu0 (!%p140_p2), %v726_v4  ;;  %v734_v12 = vld [vmem:[%s911_s1 + $0x58] sm:$0xff] (!%p140_p2)   ;;  %v738_v16 = vld [vmem:[%s911_s1 + $0x60] sm:$0xff] (!%p140_p2)   ;;  %v742_v20 = vld [vmem:[%s911_s1 + $0x68] sm:$0xff] (!%p140_p2)  }
   0xa   : > { %694 = vmatprep.subr.bf16.mxu1 (!%p140_p2), %v727_v5  ;;  %v735_v13 = vld [vmem:[%s911_s1 + $0xd8] sm:$0xff] (!%p140_p2)   ;;  %v739_v17 = vld [vmem:[%s911_s1 + $0xe0] sm:$0xff] (!%p140_p2)   ;;  %v743_v21 = vld [vmem:[%s911_s1 + $0xe8] sm:$0xff] (!%p140_p2)  }
   0xb   : > { %v736_v14 = vld [vmem:[%s911_s1 + $0x18] sm:$0xff] (!%p140_p2)   ;;  %v740_v18 = vld [vmem:[%s911_s1 + $0x20] sm:$0xff] (!%p140_p2)   ;;  %v744_v22 = vld [vmem:[%s911_s1 + $0x28] sm:$0xff] (!%p140_p2)  }
   0xc   : > { %673 = vmatpush3.bf16.msra.mxu0 (!%p140_p2), %v728_v6  ;;  %v737_v15 = vld [vmem:[%s911_s1 + $0x98] sm:$0xff] (!%p140_p2)   ;;  %v741_v19 = vld [vmem:[%s911_s1 + $0xa0] sm:$0xff] (!%p140_p2)   ;;  %v745_v23 = vld [vmem:[%s911_s1 + $0xa8] sm:$0xff] (!%p140_p2)  }
   0xd   : > { %695 = vmatpush3.bf16.msra.mxu1 %v729_v7  ;;  %674 = vmatprep.subr.bf16.mxu0 %v730_v8  ;;  %s915_s21 = smov (!%p165_p3, %s621_s21), 3  ;;  %v746_v24 = vld [vmem:[%s911_s1 + $0x70] sm:$0xff]   ;;  %v750_v28 = vld [vmem:[%s911_s1 + $0x78] sm:$0xff]   ;;  %v626_v38 = vld [vmem:[%s912_s2] ss:$0 sm:$0xff] }
   0xe   : > { %696 = vmatprep.subr.bf16.mxu1 %v731_v9  ;;  %v747_v25 = vld [vmem:[%s911_s1 + $0xf0] sm:$0xff]   ;;  %s667_s18 = sshll.u32 %s915_s21, 4  ;;  %v751_v29 = vld [vmem:[%s911_s1 + $0xf8] sm:$0xff]   ;;  %s625_s7 = sshll.u32 %s915_s21, 2 }
   0xf   : > { %v748_v26 = vld [vmem:[%s911_s1 + $0x30] sm:$0xff]   ;;  %s169_s28 = scalar_lea.vmem %s910_s0, %s667_s18  ;;  %v752_v30 = vld [vmem:[%s911_s1 + $0x38] sm:$0xff]   ;;  %s175_s10 = scalar_lea.vmem %s913_s3, %s625_s7 }
  0x10   : > { %675 = vmatpush3.bf16.msra.mxu0 %v732_v10  ;;  %v749_v27 = vld [vmem:[%s911_s1 + $0xb0] sm:$0xff]   ;;  %v753_v31 = vld [vmem:[%s911_s1 + $0xb8] sm:$0xff]  }
  0x11   : > { %697 = vmatpush3.bf16.msra.mxu1 %v733_v11  ;;  %676 = vmatprep.subr.bf16.mxu0 %v734_v12  ;;  %v754_v32 = vld [vmem:[%s169_s28] ss:$16 sps:$4 sm:$0xff]   ;;  %v756_v33 = vld [vmem:[%s169_s28 + $0x4] ss:$16 sps:$4 sm:$0xff]   ;;  %v757_v34 = vld [vmem:[%s169_s28 + $0x8] ss:$16 sps:$4 sm:$0xff]  }
  0x12   : > { %698 = vmatprep.subr.bf16.mxu1 %v735_v13  ;;  %v759_v35 = vld [vmem:[%s169_s28 + $0xc] ss:$16 sps:$4 sm:$0xff]   ;;  %497 = vmatprep.mubr.bf16.mxu0 %v756_v33 }
  0x13   : > { %538 = vmatprep.mubr.bf16.mxu1 %v759_v35 }
  0x14   : > { %677 = vmatpush3.bf16.msra.mxu0 %v736_v14 }
  0x15   : > { %699 = vmatpush3.bf16.msra.mxu1 %v737_v15  ;;  %678 = vmatprep.subr.bf16.mxu0 %v738_v16 }
  0x16   : > { %700 = vmatprep.subr.bf16.mxu1 %v739_v17 }
  0x18   : > { %679 = vmatpush3.bf16.msra.mxu0 %v740_v18 }
  0x19   : > { %701 = vmatpush3.bf16.msra.mxu1 %v741_v19  ;;  %680 = vmatprep.subr.bf16.mxu0 %v742_v20 }
  0x1a   : > { %702 = vmatprep.subr.bf16.mxu1 %v743_v21 }
  0x1c   : > { %681 = vmatpush3.bf16.msra.mxu0 %v744_v22 }
  0x1d   : > { %703 = vmatpush3.bf16.msra.mxu1 %v745_v23  ;;  %682 = vmatprep.subr.bf16.mxu0 %v746_v24 }
  0x1e   : > { %704 = vmatprep.subr.bf16.mxu1 %v747_v25 }
  0x20   : > { %683 = vmatpush3.bf16.msra.mxu0 %v748_v26 }
  0x21   : > { %705 = vmatpush3.bf16.msra.mxu1 %v749_v27  ;;  %684 = vmatprep.subr.bf16.mxu0 %v750_v28 }
  0x22   : > { %706 = vmatprep.subr.bf16.mxu1 %v751_v29 }
  0x24   : > { %685 = vmatpush3.bf16.msra.mxu0 %v752_v30 }
  0x25   : > { %707 = vmatpush3.bf16.msra.mxu1 %v753_v31 }
  0x27   : > { %498 = vmatmul.mubr.bf16.vlgmr.msra.gmra.mrb[0].mxu0 %v754_v32 }
  0x28   : > { %539 = vmatmul.mubr.bf16.vlgmr.msra.gmra.mrb[0].mxu1 %v757_v34 }
  0xfa   : > { %v686_v36 = vpop.f32.mrb[0].mxu0 }
  0xfb   : > { %v708_v37 = vpop.f32.mrb[0].mxu1  ;;  %v687_v39 = vpop.f32.mrb[1].mxu0 }
  0xfc   : > { %v688_v40 = vadd.f32 %v687_v39, %v686_v36  ;;  %v709_v41 = vpop.f32.mrb[1].mxu1  ;;  %v689_v42 = vpop.f32.mrb[2].mxu0 }
  0xfd   : > { %v710_v43 = vadd.f32 %v709_v41, %v708_v37  ;;  %v711_v44 = vpop.f32.mrb[2].mxu1  ;;  %v690_v45 = vpop.f32.mrb[3].mxu0 }
  0xfe   : > { %v500_v46 = vadd.f32 %v688_v40, %v626_v38  ;;  %v691_v47 = vadd.f32 %v690_v45, %v689_v42  ;;  %v712_v48 = vpop.f32.mrb[3].mxu1 }
  0xff   : > { %v713_v49 = vadd.f32 %v712_v48, %v711_v44 }
 0x100   : > { %v541_v50 = vadd.f32 %v710_v43, %v500_v46  ;;  %v503_v51 = vadd.f32 %v691_v47, %v626_v38 }
 0x102   : > { %v547_v52 = vmax.f32 %v541_v50, 0.0  ;;  %v544_v53 = vadd.f32 %v713_v49, %v503_v51 }
 0x104   : > { %v668_v54 = vpack.c.bf16 %v547_v52, %v547_v52  ;;  %v548_v55 = vmax.f32 %v544_v53, 0.0 }
 0x106   : > { %558 = vst.msk [vmem:[%s175_s10] sm:$0xf] %vm557_vm0, %v668_v54  ;;  %v669_v56 = vpack.c.bf16 %v548_v55, %v548_v55 }
 0x108   : > { %559 = vst.msk [vmem:[%s175_s10 + $0x4] sm:$0xf] %vm557_vm0, %v669_v56 }
 0x109 PF: > { %s13_s12 = sadd.s32 1, %s766_s12  }
 0x10a   : > { %p10_p4 = scmp.ge.s32.totalorder %s13_s12, 4  }
 0x10c   :  { %12 = sbr.rel (!%p10_p4) target bundleno = 1 (0x1), region = 62 }

// kernel: _lambda_.6
= control target key start
LH: loop header
LB: loop body
LE: loop exit
PB: predicated region body
PF: predicated region fallthrough
CT: control target
= control target key end

     0   :  { %s901_s12 = smov 0   ;;  %s1042_s0 = inlined_call_operand.vmem [shape: bf16[32,576], index: 0, kind: input, shape index: {}]   ;;  %s1043_s1 = inlined_call_operand.vmem [shape: bf16[576,64], index: 1, kind: input, shape index: {}]   ;;  %s1044_s2 = inlined_call_operand.vmem [shape: f32[1,64], index: 2, kind: input, shape index: {}]   ;;  %s1045_s3 = inlined_call_operand.vmem [shape: bf16[32,64], index: 3, kind: output, shape index: {}]  }
   0x1 LB: > { %s698_s13 = sadd.s32 4294967295, %s877_s12   ;;  %p702_p0 = scmp.ge.s32.totalorder %s877_s12, 1  ;;  %s877_s12 = sphi %s901_s12, %s13_s12  }
   0x2   : > { %p139_p1 = scmp.lt.s32.totalorder %s877_s12, 3 }
   0x4   : > { %p140_p2 = pnand %p702_p0, %p139_p1 }
   0x5   : > { %v828_v0 = vld [vmem:[%s1043_s1 + $0x40] sm:$0xff] (!%p140_p2)   ;;  %v832_v4 = vld [vmem:[%s1043_s1 + $0x48] sm:$0xff] (!%p140_p2)   ;;  %v836_v8 = vld [vmem:[%s1043_s1 + $0x50] sm:$0xff] (!%p140_p2)   ;;  %s703_s17 = sshll.u32 (!%p140_p2), %s698_s13, 1  ;;  %v879_v33 = vmov (!%p140_p2), 0.0   ;;  %vm880_vm0 = vmmov (!%p140_p2), 0  }
   0x6   : > { %143 = sbr.rel (%p140_p2) target bundleno = 273 (0x111), region = 32  ;;  %v829_v1 = vld [vmem:[%s1043_s1] sm:$0xff] (!%p140_p2)   ;;  %756 = vmatprep.subr.bf16.mxu0 (!%p140_p2), %v828_v0  ;;  %v833_v5 = vld [vmem:[%s1043_s1 + $0x8] sm:$0xff] (!%p140_p2)   ;;  %v837_v9 = vld [vmem:[%s1043_s1 + $0x10] sm:$0xff] (!%p140_p2)   ;;  %p165_p3 = scmp.lt.s32.totalorder (!%p140_p2), %s703_s17, 3  ;;  %vm504_vm1 = vcmask (!%p140_p2), 523264  }
   0x7   : > { %v830_v2 = vld [vmem:[%s1043_s1 + $0xc0] sm:$0xff] (!%p140_p2)   ;;  %757 = vmatpush3.bf16.msra.mxu0 (!%p140_p2), %v829_v1  ;;  %v834_v6 = vld [vmem:[%s1043_s1 + $0xc8] sm:$0xff] (!%p140_p2)   ;;  %v838_v10 = vld [vmem:[%s1043_s1 + $0xd0] sm:$0xff] (!%p140_p2)   ;;  %vm639_vm2 = vcmask (!%p140_p2), 519168  }
   0x8   : > { %v831_v3 = vld [vmem:[%s1043_s1 + $0x80] sm:$0xff] (!%p140_p2)   ;;  %778 = vmatprep.subr.bf16.mxu1 (!%p140_p2), %v830_v2  ;;  %758 = vmatprep.subr.bf16.mxu0 (!%p140_p2), %v832_v4  ;;  %v835_v7 = vld [vmem:[%s1043_s1 + $0x88] sm:$0xff] (!%p140_p2)   ;;  %v839_v11 = vld [vmem:[%s1043_s1 + $0x90] sm:$0xff] (!%p140_p2)  }
   0x9   : > { %779 = vmatpush3.bf16.msra.mxu1 (!%p140_p2), %v831_v3  ;;  %v840_v12 = vld [vmem:[%s1043_s1 + $0x58] sm:$0xff] (!%p140_p2)   ;;  %v844_v16 = vld [vmem:[%s1043_s1 + $0x60] sm:$0xff] (!%p140_p2)   ;;  %v848_v20 = vld [vmem:[%s1043_s1 + $0x68] sm:$0xff] (!%p140_p2)  }
   0xa   : > { %780 = vmatprep.subr.bf16.mxu1 (!%p140_p2), %v834_v6  ;;  %v841_v13 = vld [vmem:[%s1043_s1 + $0x18] sm:$0xff] (!%p140_p2)   ;;  %v845_v17 = vld [vmem:[%s1043_s1 + $0x20] sm:$0xff] (!%p140_p2)   ;;  %v849_v21 = vld [vmem:[%s1043_s1 + $0x28] sm:$0xff] (!%p140_p2)  }
   0xb   : > { %759 = vmatpush3.bf16.msra.mxu0 (!%p140_p2), %v833_v5  ;;  %v842_v14 = vld [vmem:[%s1043_s1 + $0xd8] sm:$0xff] (!%p140_p2)   ;;  %v846_v18 = vld [vmem:[%s1043_s1 + $0xe0] sm:$0xff] (!%p140_p2)   ;;  %v850_v22 = vld [vmem:[%s1043_s1 + $0xe8] sm:$0xff] (!%p140_p2)  }
   0xc   : > { %760 = vmatprep.subr.bf16.mxu0 (!%p140_p2), %v836_v8  ;;  %v843_v15 = vld [vmem:[%s1043_s1 + $0x98] sm:$0xff] (!%p140_p2)   ;;  %v847_v19 = vld [vmem:[%s1043_s1 + $0xa0] sm:$0xff] (!%p140_p2)   ;;  %v851_v23 = vld [vmem:[%s1043_s1 + $0xa8] sm:$0xff] (!%p140_p2)  }
   0xd   : > { %781 = vmatpush3.bf16.msra.mxu1 %v835_v7  ;;  %s1047_s17 = smov (!%p165_p3, %s703_s17), 3  ;;  %v852_v24 = vld [vmem:[%s1043_s1 + $0x70] sm:$0xff]   ;;  %v856_v28 = vld [vmem:[%s1043_s1 + $0x78] sm:$0xff]   ;;  %v866_v37 = vld [vmem:[%s1043_s1 + $0x100] sm:$0xff]  }
   0xe   : > { %782 = vmatprep.subr.bf16.mxu1 %v838_v10  ;;  %s817_s14 = smul.u32 20, %s1047_s17  ;;  %v853_v25 = vld [vmem:[%s1043_s1 + $0x30] sm:$0xff]   ;;  %v857_v29 = vld [vmem:[%s1043_s1 + $0x38] sm:$0xff]   ;;  %v867_v38 = vld [vmem:[%s1043_s1 + $0x108] sm:$0xff]   ;;  %s706_s18 = sshll.u32 %s1047_s17, 2 }
   0xf   : > { %761 = vmatpush3.bf16.msra.mxu0 %v837_v9  ;;  %v854_v26 = vld [vmem:[%s1043_s1 + $0xf0] sm:$0xff]   ;;  %v858_v30 = vld [vmem:[%s1043_s1 + $0xf8] sm:$0xff]   ;;  %v707_v43 = vld [vmem:[%s1044_s2] ss:$0 sm:$0xff]  ;;  %s175_s21 = scalar_lea.vmem %s1045_s3, %s706_s18 }
  0x10   : > { %762 = vmatprep.subr.bf16.mxu0 %v840_v12  ;;  %v855_v27 = vld [vmem:[%s1043_s1 + $0xb0] sm:$0xff]   ;;  %s1004_s13 = scalar_lea.vmem %s1042_s0, %s817_s14  ;;  %v862_v34 = vld [vmem:[%s1043_s1 + $0xb8] sm:$0xff]  }
  0x11   : > { %783 = vmatpush3.bf16.msra.mxu1 %v839_v11  ;;  %v859_v31 = vld [vmem:[%s1004_s13] ss:$20 sps:$4 sm:$0xff]   ;;  %v861_v32 = vld [vmem:[%s1004_s13 + $0x4] ss:$20 sps:$4 sm:$0xff]   ;;  %v863_v35 = vld [vmem:[%s1004_s13 + $0x8] ss:$20 sps:$4 sm:$0xff]  }
  0x12   : > { %784 = vmatprep.subr.bf16.mxu1 %v842_v14  ;;  %540 = vmatprep.mubr.bf16.mxu0 %v861_v32  ;;  %v865_v36 = vld [vmem:[%s1004_s13 + $0xc] ss:$20 sps:$4 sm:$0xff]   ;;  %v868_v39 = vld [vmem:[%s1043_s1 + $0x110] sm:$0xff]   ;;  %v869_v40 = vld [vmem:[%s1043_s1 + $0x118] sm:$0xff]  }
  0x13   : > { %763 = vmatpush3.bf16.msra.mxu0 %v841_v13  ;;  %581 = vmatprep.mubr.bf16.mxu1 %v865_v36  ;;  %v870_v41 = vld [vmem:[%s1004_s13 + $0x10] ss:$20 sps:$4 sm:$0xff]  }
  0x14   : > { %764 = vmatprep.subr.bf16.mxu0 %v844_v16 }
  0x15   : > { %785 = vmatpush3.bf16.msra.mxu1 %v843_v15 }
  0x16   : > { %786 = vmatprep.subr.bf16.mxu1 %v846_v18 }
  0x17   : > { %765 = vmatpush3.bf16.msra.mxu0 %v845_v17 }
  0x18   : > { %766 = vmatprep.subr.bf16.mxu0 %v848_v20 }
  0x19   : > { %787 = vmatpush3.bf16.msra.mxu1 %v847_v19 }
  0x1a   : > { %788 = vmatprep.subr.bf16.mxu1 %v850_v22 }
  0x1b   : > { %767 = vmatpush3.bf16.msra.mxu0 %v849_v21 }
  0x1c   : > { %768 = vmatprep.subr.bf16.mxu0 %v852_v24 }
  0x1d   : > { %789 = vmatpush3.bf16.msra.mxu1 %v851_v23 }
  0x1e   : > { %790 = vmatprep.subr.bf16.mxu1 %v854_v26 }
  0x1f   : > { %769 = vmatpush3.bf16.msra.mxu0 %v853_v25 }
  0x20   : > { %770 = vmatprep.subr.bf16.mxu0 %v856_v28 }
  0x21   : > { %791 = vmatpush3.bf16.msra.mxu1 %v855_v27 }
  0x22   : > { %792 = vmatprep.subr.bf16.mxu1 %v858_v30 }
  0x23   : > { %771 = vmatpush3.bf16.msra.mxu0 %v857_v29 }
  0x24   : > { %805 = vmatprep.subr.bf16.mxu0 %v879_v33 }
  0x25   : > { %793 = vmatpush3.bf16.msra.mxu1 %v862_v34 }
  0x26   : > { %541 = vmatmul.mubr.bf16.vlgmr.msra.gmra.mrb[0].mxu0 %v859_v31 }
  0x27   : > { %813 = vmatprep.mubr.msk.bf16.mxu0 %vm880_vm0, %v879_v33  ;;  %806 = vmatpush3.bf16.msra.mxu0 %v866_v37 }
  0x28   : > { %582 = vmatmul.mubr.bf16.vlgmr.msra.gmra.mrb[0].mxu1 %v863_v35  ;;  %807 = vmatprep.subr.bf16.mxu0 %v879_v33 }
  0x2b   : > { %808 = vmatpush3.bf16.msra.mxu0 %v867_v38 }
  0x2c   : > { %809 = vmatprep.subr.bf16.mxu0 %v879_v33 }
  0x2f   : > { %810 = vmatpush3.bf16.msra.mxu0 %v868_v39 }
  0x30   : > { %811 = vmatprep.subr.bf16.mxu0 %v879_v33 }
  0x33   : > { %812 = vmatpush3.bf16.msra.mxu0 %v869_v40 }
  0x36   : > { %814 = vmatmul.mubr.msk.bf16.vlgmr.msra.gmra.mrb[4].mxu0 %vm504_vm1, %v870_v41 }
  0xf9   : > { %v772_v42 = vpop.f32.mrb[0].mxu0 }
  0xfa   : > { %v773_v44 = vpop.f32.mrb[1].mxu0 }
  0xfb   : > { %v774_v45 = vadd.f32 %v773_v44, %v772_v42  ;;  %v775_v46 = vpop.f32.mrb[2].mxu0  ;;  %v794_v47 = vpop.f32.mrb[0].mxu1 }
  0xfc   : > { %v776_v48 = vpop.f32.mrb[3].mxu0  ;;  %v795_v51 = vpop.f32.mrb[1].mxu1 }
  0xfd   : > { %v543_v49 = vadd.f32 %v774_v45, %v707_v43  ;;  %v777_v50 = vadd.f32 %v776_v48, %v775_v46  ;;  %v796_v52 = vadd.f32 %v795_v51, %v794_v47  ;;  %v797_v53 = vpop.f32.mrb[2].mxu1 }
  0xfe   : > { %v798_v55 = vpop.f32.mrb[3].mxu1 }
  0xff   : > { %v546_v54 = vadd.f32 %v777_v50, %v707_v43  ;;  %v799_v56 = vadd.f32 %v798_v55, %v797_v53  ;;  %v584_v57 = vadd.f32 %v796_v52, %v543_v49 }
 0x101   : > { %v587_v58 = vadd.f32 %v799_v56, %v546_v54 }
 0x109   : > { %v624_v59 = vpop.f32.mrb[4].mxu0 }
 0x10a   : > { %v625_v60 = vadd.f32 %v624_v59, %v584_v57  ;;  %v815_v61 = vpop.f32.mrb[5].mxu0 }
 0x10b   : > { %v627_v62 = vpop.f32.mrb[6].mxu0 }
 0x10c   : > { %v754_v63 = vpack.c.bf16 %v625_v60, %v625_v60  ;;  %v628_v0 = vadd.f32 %v627_v62, %v587_v58  ;;  %v816_v1 = vpop.f32.mrb[7].mxu0 }
 0x10e   : > { %640 = vst.msk [vmem:[%s175_s21] sm:$0xf] %vm639_vm2, %v754_v63  ;;  %v755_v2 = vpack.c.bf16 %v628_v0, %v628_v0 }
 0x110   : > { %641 = vst.msk [vmem:[%s175_s21 + $0x4] sm:$0xf] %vm639_vm2, %v755_v2 }
 0x111 PF: > { %s13_s12 = sadd.s32 1, %s877_s12  }
 0x112   : > { %p10_p4 = scmp.ge.s32.totalorder %s13_s12, 4  }
 0x114   :  { %12 = sbr.rel (!%p10_p4) target bundleno = 1 (0x1), region = 62 }

// kernel: _lambda_.7
= control target key start
LH: loop header
LB: loop body
LE: loop exit
PB: predicated region body
PF: predicated region fallthrough
CT: control target
= control target key end

     0   :  { %vm938_vm0 = vcmask 523264   ;;  %vm1557_vm1 = vcmask 48128   ;;  %s2685_s1 = inlined_call_operand.vmem [shape: bf16[576,512], index: 1, kind: input, shape index: {}]   ;;  %s2686_s0 = inlined_call_operand.vmem [shape: bf16[16,576], index: 0, kind: input, shape index: {}]   ;;  %s2687_s3 = inlined_call_operand.vmem [shape: bf16[512,128], index: 3, kind: input, shape index: {}]   ;;  %s2688_s2 = inlined_call_operand.vmem [shape: f32[1,512], index: 2, kind: input, shape index: {}]   ;;  %s2689_s4 = inlined_call_operand.vmem [shape: f32[1,128], index: 4, kind: input, shape index: {}]   ;;  %s2690_s5 = inlined_call_operand.vmem [shape: f32[16,128], index: 5, kind: output, shape index: {}]  }
   0x1   :  { %v1843_v0 = vld [vmem:[%s2685_s1 + $0x4] ss:$16 sps:$4 sm:$0xff]   ;;  %v1845_v1 = vld [vmem:[%s2685_s1 + $0xc] ss:$16 sps:$4 sm:$0xff]   ;;  %v1847_v2 = vld [vmem:[%s2685_s1] ss:$16 sps:$4 sm:$0xff]  }
   0x2   :  { %942 = vmatprep.subr.bf16.mxu0 %v1843_v0  ;;  %v1848_v3 = vld [vmem:[%s2685_s1 + $0x8] ss:$16 sps:$4 sm:$0xff]   ;;  %1071 = vmatprep.subr.bf16.mxu1 %v1845_v1  ;;  %v1849_v4 = vld [vmem:[%s2685_s1 + $0x24] ss:$16 sps:$4 sm:$0xff]   ;;  %v1851_v5 = vld [vmem:[%s2685_s1 + $0x2c] ss:$16 sps:$4 sm:$0xff]  }
   0x3   :  { %943 = vmatpush1.bf16.msra.mxu0 %v1847_v2  ;;  %1072 = vmatpush1.bf16.msra.mxu1 %v1848_v3  ;;  %v1853_v6 = vld [vmem:[%s2685_s1 + $0x20] ss:$16 sps:$4 sm:$0xff]   ;;  %v1854_v7 = vld [vmem:[%s2685_s1 + $0x28] ss:$16 sps:$4 sm:$0xff]   ;;  %v1855_v8 = vld [vmem:[%s2685_s1 + $0x44] ss:$16 sps:$4 sm:$0xff]  }
   0x4   :  { %944 = vmatprep.subr.bf16.mxu0 %v1849_v4  ;;  %1073 = vmatprep.subr.bf16.mxu1 %v1851_v5  ;;  %v1857_v9 = vld [vmem:[%s2685_s1 + $0x4c] ss:$16 sps:$4 sm:$0xff]   ;;  %v1859_v10 = vld [vmem:[%s2685_s1 + $0x40] ss:$16 sps:$4 sm:$0xff]   ;;  %v1860_v11 = vld [vmem:[%s2685_s1 + $0x48] ss:$16 sps:$4 sm:$0xff]  }
   0x5   :  { %v1861_v12 = vld [vmem:[%s2685_s1 + $0x64] ss:$16 sps:$4 sm:$0xff]   ;;  %v1863_v13 = vld [vmem:[%s2685_s1 + $0x6c] ss:$16 sps:$4 sm:$0xff]   ;;  %v1865_v14 = vld [vmem:[%s2685_s1 + $0x60] ss:$16 sps:$4 sm:$0xff]  }
   0x6   :  { %v1866_v15 = vld [vmem:[%s2685_s1 + $0x68] ss:$16 sps:$4 sm:$0xff]   ;;  %v1867_v16 = vld [vmem:[%s2685_s1 + $0x84] ss:$16 sps:$4 sm:$0xff]   ;;  %v1869_v17 = vld [vmem:[%s2685_s1 + $0x8c] ss:$16 sps:$4 sm:$0xff]  }
   0x7   :  { %945 = vmatpush1.bf16.msra.mxu0 %v1853_v6  ;;  %1074 = vmatpush1.bf16.msra.mxu1 %v1854_v7  ;;  %v1871_v18 = vld [vmem:[%s2685_s1 + $0x80] ss:$16 sps:$4 sm:$0xff]   ;;  %v1872_v19 = vld [vmem:[%s2685_s1 + $0x88] ss:$16 sps:$4 sm:$0xff]   ;;  %v1873_v20 = vld [vmem:[%s2685_s1 + $0xa4] ss:$16 sps:$4 sm:$0xff]  }
   0x8   :  { %946 = vmatprep.subr.bf16.mxu0 %v1855_v8  ;;  %1075 = vmatprep.subr.bf16.mxu1 %v1857_v9  ;;  %v1875_v21 = vld [vmem:[%s2685_s1 + $0xac] ss:$16 sps:$4 sm:$0xff]   ;;  %v1877_v22 = vld [vmem:[%s2685_s1 + $0xa0] ss:$16 sps:$4 sm:$0xff]   ;;  %v1878_v23 = vld [vmem:[%s2685_s1 + $0xa8] ss:$16 sps:$4 sm:$0xff]  }
   0x9   :  { %v1879_v24 = vld [vmem:[%s2685_s1 + $0xc4] ss:$16 sps:$4 sm:$0xff]   ;;  %v1881_v25 = vld [vmem:[%s2685_s1 + $0xcc] ss:$16 sps:$4 sm:$0xff]   ;;  %v1883_v26 = vld [vmem:[%s2685_s1 + $0xc0] ss:$16 sps:$4 sm:$0xff]  }
   0xa   :  { %v1884_v27 = vld [vmem:[%s2685_s1 + $0xc8] ss:$16 sps:$4 sm:$0xff]   ;;  %v1885_v28 = vld [vmem:[%s2685_s1 + $0xe4] ss:$16 sps:$4 sm:$0xff]   ;;  %v1887_v29 = vld [vmem:[%s2685_s1 + $0xec] ss:$16 sps:$4 sm:$0xff]  }
   0xb   :  { %947 = vmatpush1.bf16.msra.mxu0 %v1859_v10  ;;  %1076 = vmatpush1.bf16.msra.mxu1 %v1860_v11  ;;  %v1889_v30 = vld [vmem:[%s2685_s1 + $0xe0] ss:$16 sps:$4 sm:$0xff]   ;;  %v1890_v31 = vld [vmem:[%s2685_s1 + $0xe8] ss:$16 sps:$4 sm:$0xff]   ;;  %v1891_v32 = vld [vmem:[%s2685_s1 + $0x104] ss:$16 sps:$4 sm:$0xff]  }
   0xc   :  { %948 = vmatprep.subr.bf16.mxu0 %v1861_v12  ;;  %1077 = vmatprep.subr.bf16.mxu1 %v1863_v13  ;;  %v1893_v33 = vld [vmem:[%s2685_s1 + $0x10c] ss:$16 sps:$4 sm:$0xff]   ;;  %v1895_v34 = vld [vmem:[%s2685_s1 + $0x100] ss:$16 sps:$4 sm:$0xff]   ;;  %v1896_v35 = vld [vmem:[%s2685_s1 + $0x108] ss:$16 sps:$4 sm:$0xff]  }
   0xd   :  { %v1897_v36 = vld [vmem:[%s2685_s1 + $0x124] ss:$16 sps:$4 sm:$0xff]   ;;  %v1899_v37 = vld [vmem:[%s2685_s1 + $0x12c] ss:$16 sps:$4 sm:$0xff]   ;;  %v1901_v38 = vld [vmem:[%s2685_s1 + $0x120] ss:$16 sps:$4 sm:$0xff]  }
   0xe   :  { %v1902_v39 = vld [vmem:[%s2685_s1 + $0x128] ss:$16 sps:$4 sm:$0xff]   ;;  %v1903_v40 = vld [vmem:[%s2685_s1 + $0x144] ss:$16 sps:$4 sm:$0xff]   ;;  %v1905_v41 = vld [vmem:[%s2685_s1 + $0x14c] ss:$16 sps:$4 sm:$0xff]  }
   0xf   :  { %949 = vmatpush1.bf16.msra.mxu0 %v1865_v14  ;;  %1078 = vmatpush1.bf16.msra.mxu1 %v1866_v15  ;;  %v1907_v42 = vld [vmem:[%s2685_s1 + $0x140] ss:$16 sps:$4 sm:$0xff]   ;;  %v1908_v43 = vld [vmem:[%s2685_s1 + $0x148] ss:$16 sps:$4 sm:$0xff]   ;;  %v1909_v44 = vld [vmem:[%s2685_s1 + $0x164] ss:$16 sps:$4 sm:$0xff]  }
  0x10   :  { %950 = vmatprep.subr.bf16.mxu0 %v1867_v16  ;;  %1079 = vmatprep.subr.bf16.mxu1 %v1869_v17  ;;  %v1911_v45 = vld [vmem:[%s2685_s1 + $0x16c] ss:$16 sps:$4 sm:$0xff]   ;;  %v1913_v46 = vld [vmem:[%s2685_s1 + $0x160] ss:$16 sps:$4 sm:$0xff]   ;;  %v1914_v47 = vld [vmem:[%s2685_s1 + $0x168] ss:$16 sps:$4 sm:$0xff]  }
  0x11   :  { %v1941_v48 = vld [vmem:[%s2686_s0 + $0x4] ss:$20 sps:$4 sm:$0xff]   ;;  %v1917_v50 = vld [vmem:[%s2685_s1 + $0x18c] ss:$16 sps:$4 sm:$0xff]   ;;  %v1919_v51 = vld [vmem:[%s2685_s1 + $0x180] ss:$16 sps:$4 sm:$0xff]  }
  0x12   :  { %v1915_v49 = vld [vmem:[%s2685_s1 + $0x184] ss:$16 sps:$4 sm:$0xff]   ;;  %974 = vmatprep.mubr.bf16.mxu0 %v1941_v48  ;;  %1103 = vmatprep.mubr.bf16.mxu1 %v1941_v48  ;;  %v1920_v52 = vld [vmem:[%s2685_s1 + $0x188] ss:$16 sps:$4 sm:$0xff]   ;;  %v1923_v54 = vld [vmem:[%s2685_s1 + $0x1ac] ss:$16 sps:$4 sm:$0xff]  }
  0x13   :  { %951 = vmatpush1.bf16.msra.mxu0 %v1871_v18  ;;  %1080 = vmatpush1.bf16.msra.mxu1 %v1872_v19  ;;  %v1921_v53 = vld [vmem:[%s2685_s1 + $0x1a4] ss:$16 sps:$4 sm:$0xff]   ;;  %v1925_v55 = vld [vmem:[%s2685_s1 + $0x1a0] ss:$16 sps:$4 sm:$0xff]   ;;  %v1926_v56 = vld [vmem:[%s2685_s1 + $0x1a8] ss:$16 sps:$4 sm:$0xff]  }
  0x14   :  { %952 = vmatprep.subr.bf16.mxu0 %v1873_v20  ;;  %1081 = vmatprep.subr.bf16.mxu1 %v1875_v21  ;;  %v1927_v57 = vld [vmem:[%s2685_s1 + $0x1c4] ss:$16 sps:$4 sm:$0xff]   ;;  %v1929_v58 = vld [vmem:[%s2685_s1 + $0x1cc] ss:$16 sps:$4 sm:$0xff]   ;;  %v1931_v59 = vld [vmem:[%s2685_s1 + $0x1c0] ss:$16 sps:$4 sm:$0xff]  }
  0x15   :  { %v1932_v60 = vld [vmem:[%s2685_s1 + $0x1c8] ss:$16 sps:$4 sm:$0xff]   ;;  %v1933_v61 = vld [vmem:[%s2685_s1 + $0x1e4] ss:$16 sps:$4 sm:$0xff]   ;;  %v1935_v62 = vld [vmem:[%s2685_s1 + $0x1ec] ss:$16 sps:$4 sm:$0xff]  }
  0x16   :  { %v1937_v63 = vld [vmem:[%s2685_s1 + $0x1e0] ss:$16 sps:$4 sm:$0xff]   ;;  %v1938_v0 = vld [vmem:[%s2685_s1 + $0x1e8] ss:$16 sps:$4 sm:$0xff]   ;;  %v1944_v1 = vld [vmem:[%s2685_s1 + $0x204] ss:$16 sps:$4 sm:$0xff]  }
  0x17   :  { %953 = vmatpush1.bf16.msra.mxu0 %v1877_v22  ;;  %1082 = vmatpush1.bf16.msra.mxu1 %v1878_v23  ;;  %v1947_v2 = vld [vmem:[%s2685_s1 + $0x20c] ss:$16 sps:$4 sm:$0xff]   ;;  %v1939_v3 = vld [vmem:[%s2686_s0] ss:$20 sps:$4 sm:$0xff]   ;;  %v1945_v5 = vld [vmem:[%s2685_s1 + $0x208] ss:$16 sps:$4 sm:$0xff]  }
  0x18   :  { %954 = vmatprep.subr.bf16.mxu0 %v1879_v24  ;;  %1083 = vmatprep.subr.bf16.mxu1 %v1881_v25  ;;  %v1942_v4 = vld [vmem:[%s2685_s1 + $0x200] ss:$16 sps:$4 sm:$0xff]   ;;  %v1950_v6 = vld [vmem:[%s2685_s1 + $0x224] ss:$16 sps:$4 sm:$0xff]   ;;  %v1953_v7 = vld [vmem:[%s2685_s1 + $0x22c] ss:$16 sps:$4 sm:$0xff]  }
  0x19   :  { %v1948_v8 = vld [vmem:[%s2685_s1 + $0x220] ss:$16 sps:$4 sm:$0xff]   ;;  %v1951_v9 = vld [vmem:[%s2685_s1 + $0x228] ss:$16 sps:$4 sm:$0xff]   ;;  %v1956_v10 = vld [vmem:[%s2685_s1 + $0x244] ss:$16 sps:$4 sm:$0xff]  }
  0x1a   :  { %v1959_v11 = vld [vmem:[%s2685_s1 + $0x24c] ss:$16 sps:$4 sm:$0xff]   ;;  %v1954_v12 = vld [vmem:[%s2685_s1 + $0x240] ss:$16 sps:$4 sm:$0xff]   ;;  %v1957_v13 = vld [vmem:[%s2685_s1 + $0x248] ss:$16 sps:$4 sm:$0xff]  }
  0x1b   :  { %955 = vmatpush1.bf16.msra.mxu0 %v1883_v26  ;;  %1084 = vmatpush1.bf16.msra.mxu1 %v1884_v27  ;;  %v1962_v14 = vld [vmem:[%s2685_s1 + $0x264] ss:$16 sps:$4 sm:$0xff]   ;;  %v1965_v15 = vld [vmem:[%s2685_s1 + $0x26c] ss:$16 sps:$4 sm:$0xff]   ;;  %v1960_v16 = vld [vmem:[%s2685_s1 + $0x260] ss:$16 sps:$4 sm:$0xff]  }
  0x1c   :  { %956 = vmatprep.subr.bf16.mxu0 %v1885_v28  ;;  %1085 = vmatprep.subr.bf16.mxu1 %v1887_v29  ;;  %v1963_v17 = vld [vmem:[%s2685_s1 + $0x268] ss:$16 sps:$4 sm:$0xff]   ;;  %v1968_v18 = vld [vmem:[%s2685_s1 + $0x284] ss:$16 sps:$4 sm:$0xff]   ;;  %v1971_v19 = vld [vmem:[%s2685_s1 + $0x28c] ss:$16 sps:$4 sm:$0xff]  }
  0x1d   :  { %v1966_v20 = vld [vmem:[%s2685_s1 + $0x280] ss:$16 sps:$4 sm:$0xff]   ;;  %v1969_v21 = vld [vmem:[%s2685_s1 + $0x288] ss:$16 sps:$4 sm:$0xff]   ;;  %v1974_v22 = vld [vmem:[%s2685_s1 + $0x2a4] ss:$16 sps:$4 sm:$0xff]  }
  0x1e   :  { %v1977_v23 = vld [vmem:[%s2685_s1 + $0x2ac] ss:$16 sps:$4 sm:$0xff]   ;;  %v1972_v24 = vld [vmem:[%s2685_s1 + $0x2a0] ss:$16 sps:$4 sm:$0xff]   ;;  %v1975_v25 = vld [vmem:[%s2685_s1 + $0x2a8] ss:$16 sps:$4 sm:$0xff]  }
  0x1f   :  { %957 = vmatpush1.bf16.msra.mxu0 %v1889_v30  ;;  %1086 = vmatpush1.bf16.msra.mxu1 %v1890_v31  ;;  %v1980_v26 = vld [vmem:[%s2685_s1 + $0x2c4] ss:$16 sps:$4 sm:$0xff]   ;;  %v1983_v27 = vld [vmem:[%s2685_s1 + $0x2cc] ss:$16 sps:$4 sm:$0xff]   ;;  %v1978_v28 = vld [vmem:[%s2685_s1 + $0x2c0] ss:$16 sps:$4 sm:$0xff]  }
  0x20   :  { %958 = vmatprep.subr.bf16.mxu0 %v1891_v32  ;;  %1087 = vmatprep.subr.bf16.mxu1 %v1893_v33  ;;  %v1981_v29 = vld [vmem:[%s2685_s1 + $0x2c8] ss:$16 sps:$4 sm:$0xff]   ;;  %v2040_v30 = vld [vmem:[%s2686_s0 + $0xc] ss:$20 sps:$4 sm:$0xff]   ;;  %v1986_v31 = vld [vmem:[%s2685_s1 + $0x2e4] ss:$16 sps:$4 sm:$0xff]  }
  0x21   :  { %v1989_v32 = vld [vmem:[%s2685_s1 + $0x2ec] ss:$16 sps:$4 sm:$0xff]   ;;  %v1984_v33 = vld [vmem:[%s2685_s1 + $0x2e0] ss:$16 sps:$4 sm:$0xff]  }
  0x22   :  { %v2013_v48 = vld [vmem:[%s2685_s1 + $0x36c] ss:$16 sps:$4 sm:$0xff]  }
  0x23   :  { %959 = vmatpush1.bf16.msra.mxu0 %v1895_v34  ;;  %1088 = vmatpush1.bf16.msra.mxu1 %v1896_v35  ;;  %v1987_v34 = vld [vmem:[%s2685_s1 + $0x2e8] ss:$16 sps:$4 sm:$0xff]   ;;  %v1992_v35 = vld [vmem:[%s2685_s1 + $0x304] ss:$16 sps:$4 sm:$0xff]  }
  0x24   :  { %960 = vmatprep.subr.bf16.mxu0 %v1897_v36  ;;  %1089 = vmatprep.subr.bf16.mxu1 %v1899_v37  ;;  %v1995_v36 = vld [vmem:[%s2685_s1 + $0x30c] ss:$16 sps:$4 sm:$0xff]   ;;  %v1990_v37 = vld [vmem:[%s2685_s1 + $0x300] ss:$16 sps:$4 sm:$0xff]  }
  0x27   :  { %961 = vmatpush1.bf16.msra.mxu0 %v1901_v38  ;;  %1090 = vmatpush1.bf16.msra.mxu1 %v1902_v39  ;;  %v1993_v38 = vld [vmem:[%s2685_s1 + $0x308] ss:$16 sps:$4 sm:$0xff]   ;;  %v1998_v39 = vld [vmem:[%s2685_s1 + $0x324] ss:$16 sps:$4 sm:$0xff]  }
  0x28   :  { %962 = vmatprep.subr.bf16.mxu0 %v1903_v40  ;;  %1091 = vmatprep.subr.bf16.mxu1 %v1905_v41  ;;  %v2001_v40 = vld [vmem:[%s2685_s1 + $0x32c] ss:$16 sps:$4 sm:$0xff]   ;;  %v1996_v41 = vld [vmem:[%s2685_s1 + $0x320] ss:$16 sps:$4 sm:$0xff]  }
  0x2b   :  { %963 = vmatpush1.bf16.msra.mxu0 %v1907_v42  ;;  %1092 = vmatpush1.bf16.msra.mxu1 %v1908_v43  ;;  %v1999_v42 = vld [vmem:[%s2685_s1 + $0x328] ss:$16 sps:$4 sm:$0xff]   ;;  %v2004_v43 = vld [vmem:[%s2685_s1 + $0x344] ss:$16 sps:$4 sm:$0xff]  }
  0x2c   :  { %964 = vmatprep.subr.bf16.mxu0 %v1909_v44  ;;  %1093 = vmatprep.subr.bf16.mxu1 %v1911_v45  ;;  %v2007_v44 = vld [vmem:[%s2685_s1 + $0x34c] ss:$16 sps:$4 sm:$0xff]   ;;  %v2002_v45 = vld [vmem:[%s2685_s1 + $0x340] ss:$16 sps:$4 sm:$0xff]  }
  0x2f   :  { %965 = vmatpush1.bf16.msra.mxu0 %v1913_v46  ;;  %1094 = vmatpush1.bf16.msra.mxu1 %v1914_v47  ;;  %v2005_v46 = vld [vmem:[%s2685_s1 + $0x348] ss:$16 sps:$4 sm:$0xff]   ;;  %v2010_v47 = vld [vmem:[%s2685_s1 + $0x364] ss:$16 sps:$4 sm:$0xff]  }
  0x30   :  { %966 = vmatprep.subr.bf16.mxu0 %v1915_v49  ;;  %1095 = vmatprep.subr.bf16.mxu1 %v1917_v50  ;;  %v2008_v49 = vld [vmem:[%s2685_s1 + $0x360] ss:$16 sps:$4 sm:$0xff]   ;;  %v2011_v50 = vld [vmem:[%s2685_s1 + $0x368] ss:$16 sps:$4 sm:$0xff]  }
  0x33   :  { %967 = vmatpush1.bf16.msra.mxu0 %v1919_v51  ;;  %1096 = vmatpush1.bf16.msra.mxu1 %v1920_v52  ;;  %v2016_v51 = vld [vmem:[%s2685_s1 + $0x384] ss:$16 sps:$4 sm:$0xff]   ;;  %v2019_v52 = vld [vmem:[%s2685_s1 + $0x38c] ss:$16 sps:$4 sm:$0xff]  }
  0x34   :  { %968 = vmatprep.subr.bf16.mxu0 %v1921_v53  ;;  %1097 = vmatprep.subr.bf16.mxu1 %v1923_v54  ;;  %v2014_v53 = vld [vmem:[%s2685_s1 + $0x380] ss:$16 sps:$4 sm:$0xff]   ;;  %v2017_v54 = vld [vmem:[%s2685_s1 + $0x388] ss:$16 sps:$4 sm:$0xff]  }
  0x37   :  { %969 = vmatpush1.bf16.msra.mxu0 %v1925_v55  ;;  %1098 = vmatpush1.bf16.msra.mxu1 %v1926_v56  ;;  %v2022_v55 = vld [vmem:[%s2685_s1 + $0x3a4] ss:$16 sps:$4 sm:$0xff]   ;;  %v2025_v56 = vld [vmem:[%s2685_s1 + $0x3ac] ss:$16 sps:$4 sm:$0xff]  }
  0x38   :  { %970 = vmatprep.subr.bf16.mxu0 %v1927_v57  ;;  %1099 = vmatprep.subr.bf16.mxu1 %v1929_v58  ;;  %v2020_v57 = vld [vmem:[%s2685_s1 + $0x3a0] ss:$16 sps:$4 sm:$0xff]   ;;  %v2023_v58 = vld [vmem:[%s2685_s1 + $0x3a8] ss:$16 sps:$4 sm:$0xff]  }
  0x3b   :  { %971 = vmatpush1.bf16.msra.mxu0 %v1931_v59  ;;  %1100 = vmatpush1.bf16.msra.mxu1 %v1932_v60  ;;  %v2028_v59 = vld [vmem:[%s2685_s1 + $0x3c4] ss:$16 sps:$4 sm:$0xff]   ;;  %v2031_v60 = vld [vmem:[%s2685_s1 + $0x3cc] ss:$16 sps:$4 sm:$0xff]  }
  0x3c   :  { %972 = vmatprep.subr.bf16.mxu0 %v1933_v61  ;;  %1101 = vmatprep.subr.bf16.mxu1 %v1935_v62  ;;  %v2026_v61 = vld [vmem:[%s2685_s1 + $0x3c0] ss:$16 sps:$4 sm:$0xff]   ;;  %v2029_v62 = vld [vmem:[%s2685_s1 + $0x3c8] ss:$16 sps:$4 sm:$0xff]  }
  0x3f   :  { %973 = vmatpush1.bf16.msra.mxu0 %v1937_v63  ;;  %1102 = vmatpush1.bf16.msra.mxu1 %v1938_v0  ;;  %v2034_v63 = vld [vmem:[%s2685_s1 + $0x3e4] ss:$16 sps:$4 sm:$0xff]   ;;  %v2037_v0 = vld [vmem:[%s2685_s1 + $0x3ec] ss:$16 sps:$4 sm:$0xff]  }
  0x40   :  { %985 = vmatprep.subr.bf16.mxu0 %v1944_v1  ;;  %1114 = vmatprep.subr.bf16.mxu1 %v1947_v2  ;;  %v2032_v1 = vld [vmem:[%s2685_s1 + $0x3e0] ss:$16 sps:$4 sm:$0xff]   ;;  %v2035_v2 = vld [vmem:[%s2685_s1 + $0x3e8] ss:$16 sps:$4 sm:$0xff]  }
  0x42   :  { %975 = vmatmul.mubr.bf16.vlgmr.msra.gmra.mrb[0].mxu0 %v1939_v3  ;;  %1104 = vmatmul.mubr.bf16.vlgmr.msra.gmra.mrb[0].mxu1 %v1939_v3  ;;  %v2043_v3 = vld [vmem:[%s2685_s1 + $0x404] ss:$16 sps:$4 sm:$0xff]  }
  0x43   :  { %986 = vmatpush1.bf16.msra.mxu0 %v1942_v4  ;;  %1115 = vmatpush1.bf16.msra.mxu1 %v1945_v5  ;;  %v2046_v4 = vld [vmem:[%s2685_s1 + $0x40c] ss:$16 sps:$4 sm:$0xff]  }
  0x44   :  { %987 = vmatprep.subr.bf16.mxu0 %v1950_v6  ;;  %1116 = vmatprep.subr.bf16.mxu1 %v1953_v7  ;;  %v2038_v5 = vld [vmem:[%s2686_s0 + $0x8] ss:$20 sps:$4 sm:$0xff]   ;;  %v2041_v6 = vld [vmem:[%s2685_s1 + $0x400] ss:$16 sps:$4 sm:$0xff]  }
  0x45   :  { %1017 = vmatprep.mubr.bf16.mxu0 %v2040_v30  ;;  %1146 = vmatprep.mubr.bf16.mxu1 %v2040_v30  ;;  %v2044_v7 = vld [vmem:[%s2685_s1 + $0x408] ss:$16 sps:$4 sm:$0xff]   ;;  %v2074_v30 = vld [vmem:[%s2687_s3 + $0x50] sm:$0xff]  }
  0x47   :  { %988 = vmatpush1.bf16.msra.mxu0 %v1948_v8  ;;  %1117 = vmatpush1.bf16.msra.mxu1 %v1951_v9  ;;  %v2049_v8 = vld [vmem:[%s2685_s1 + $0x424] ss:$16 sps:$4 sm:$0xff]   ;;  %v2052_v9 = vld [vmem:[%s2685_s1 + $0x42c] ss:$16 sps:$4 sm:$0xff]  }
  0x48   :  { %989 = vmatprep.subr.bf16.mxu0 %v1956_v10  ;;  %1118 = vmatprep.subr.bf16.mxu1 %v1959_v11  ;;  %v2047_v10 = vld [vmem:[%s2685_s1 + $0x420] ss:$16 sps:$4 sm:$0xff]   ;;  %v2050_v11 = vld [vmem:[%s2685_s1 + $0x428] ss:$16 sps:$4 sm:$0xff]  }
  0x4b   :  { %990 = vmatpush1.bf16.msra.mxu0 %v1954_v12  ;;  %1119 = vmatpush1.bf16.msra.mxu1 %v1957_v13  ;;  %v2055_v12 = vld [vmem:[%s2685_s1 + $0x444] ss:$16 sps:$4 sm:$0xff]   ;;  %v2058_v13 = vld [vmem:[%s2685_s1 + $0x44c] ss:$16 sps:$4 sm:$0xff]  }
  0x4c   :  { %991 = vmatprep.subr.bf16.mxu0 %v1962_v14  ;;  %1120 = vmatprep.subr.bf16.mxu1 %v1965_v15  ;;  %v2098_v14 = vmov 0   ;;  %v2053_v15 = vld [vmem:[%s2685_s1 + $0x440] ss:$16 sps:$4 sm:$0xff]  }
  0x4f   :  { %992 = vmatpush1.bf16.msra.mxu0 %v1960_v16  ;;  %1121 = vmatpush1.bf16.msra.mxu1 %v1963_v17  ;;  %v2056_v16 = vld [vmem:[%s2685_s1 + $0x448] ss:$16 sps:$4 sm:$0xff]   ;;  %v2061_v17 = vld [vmem:[%s2685_s1 + $0x464] ss:$16 sps:$4 sm:$0xff]  }
  0x50   :  { %993 = vmatprep.subr.bf16.mxu0 %v1968_v18  ;;  %1122 = vmatprep.subr.bf16.mxu1 %v1971_v19  ;;  %v2064_v18 = vld [vmem:[%s2685_s1 + $0x46c] ss:$16 sps:$4 sm:$0xff]   ;;  %v2059_v19 = vld [vmem:[%s2685_s1 + $0x460] ss:$16 sps:$4 sm:$0xff]  }
  0x53   :  { %994 = vmatpush1.bf16.msra.mxu0 %v1966_v20  ;;  %1123 = vmatpush1.bf16.msra.mxu1 %v1969_v21  ;;  %v2062_v20 = vld [vmem:[%s2685_s1 + $0x468] ss:$16 sps:$4 sm:$0xff]   ;;  %v2066_v21 = vld [vmem:[%s2687_s3 + $0x40] sm:$0xff]  }
  0x54   :  { %995 = vmatprep.subr.bf16.mxu0 %v1974_v22  ;;  %1124 = vmatprep.subr.bf16.mxu1 %v1977_v23  ;;  %v2067_v22 = vld [vmem:[%s2687_s3 + $0xc0] sm:$0xff]  }
  0x55   :  { %v2065_v23 = vld [vmem:[%s2686_s0 + $0x10] ss:$20 sps:$4 sm:$0xff]  }
  0x57   :  { %996 = vmatpush1.bf16.msra.mxu0 %v1972_v24  ;;  %1125 = vmatpush1.bf16.msra.mxu1 %v1975_v25  ;;  %v2068_v24 = vld [vmem:[%s2687_s3] sm:$0xff]  }
  0x58   :  { %997 = vmatprep.subr.bf16.mxu0 %v1980_v26  ;;  %1126 = vmatprep.subr.bf16.mxu1 %v1983_v27  ;;  %v2069_v25 = vld [vmem:[%s2687_s3 + $0x80] sm:$0xff]   ;;  %v2070_v26 = vld [vmem:[%s2687_s3 + $0x48] sm:$0xff]  }
  0x59   :  { %v2071_v27 = vld [vmem:[%s2687_s3 + $0xc8] sm:$0xff]  }
  0x5b   :  { %998 = vmatpush1.bf16.msra.mxu0 %v1978_v28  ;;  %1127 = vmatpush1.bf16.msra.mxu1 %v1981_v29  ;;  %v2072_v28 = vld [vmem:[%s2687_s3 + $0x8] sm:$0xff]  }
  0x5c   :  { %999 = vmatprep.subr.bf16.mxu0 %v1986_v31  ;;  %1128 = vmatprep.subr.bf16.mxu1 %v1989_v32  ;;  %v2073_v29 = vld [vmem:[%s2687_s3 + $0x88] sm:$0xff]   ;;  %v2075_v31 = vld [vmem:[%s2687_s3 + $0xd0] sm:$0xff]  }
  0x5d   :  { %v2076_v32 = vld [vmem:[%s2687_s3 + $0x10] sm:$0xff]  }
  0x5f   :  { %1000 = vmatpush1.bf16.msra.mxu0 %v1984_v33  ;;  %1129 = vmatpush1.bf16.msra.mxu1 %v1987_v34  ;;  %v2077_v33 = vld [vmem:[%s2687_s3 + $0x90] sm:$0xff]   ;;  %v2078_v34 = vld [vmem:[%s2687_s3 + $0x58] sm:$0xff]  }
  0x60   :  { %1001 = vmatprep.subr.bf16.mxu0 %v1992_v35  ;;  %1130 = vmatprep.subr.bf16.mxu1 %v1995_v36  ;;  %v2079_v35 = vld [vmem:[%s2687_s3 + $0xd8] sm:$0xff]  }
  0x61   :  { %v2080_v36 = vld [vmem:[%s2687_s3 + $0x18] sm:$0xff]  }
  0x63   :  { %1002 = vmatpush1.bf16.msra.mxu0 %v1990_v37  ;;  %1131 = vmatpush1.bf16.msra.mxu1 %v1993_v38  ;;  %v2081_v37 = vld [vmem:[%s2687_s3 + $0x98] sm:$0xff]   ;;  %v2082_v38 = vld [vmem:[%s2687_s3 + $0x60] sm:$0xff]  }
  0x64   :  { %1003 = vmatprep.subr.bf16.mxu0 %v1998_v39  ;;  %1132 = vmatprep.subr.bf16.mxu1 %v2001_v40  ;;  %v2083_v39 = vld [vmem:[%s2687_s3 + $0xe0] sm:$0xff]  }
  0x65   :  { %v2084_v40 = vld [vmem:[%s2687_s3 + $0x20] sm:$0xff]  }
  0x67   :  { %1004 = vmatpush1.bf16.msra.mxu0 %v1996_v41  ;;  %1133 = vmatpush1.bf16.msra.mxu1 %v1999_v42  ;;  %v2085_v41 = vld [vmem:[%s2687_s3 + $0xa0] sm:$0xff]   ;;  %v2086_v42 = vld [vmem:[%s2687_s3 + $0x68] sm:$0xff]  }
  0x68   :  { %1005 = vmatprep.subr.bf16.mxu0 %v2004_v43  ;;  %1134 = vmatprep.subr.bf16.mxu1 %v2007_v44  ;;  %v2087_v43 = vld [vmem:[%s2687_s3 + $0xe8] sm:$0xff]  }
  0x69   :  { %v2088_v44 = vld [vmem:[%s2687_s3 + $0x28] sm:$0xff]  }
  0x6b   :  { %1006 = vmatpush1.bf16.msra.mxu0 %v2002_v45  ;;  %1135 = vmatpush1.bf16.msra.mxu1 %v2005_v46  ;;  %v2089_v45 = vld [vmem:[%s2687_s3 + $0xa8] sm:$0xff]   ;;  %v2090_v46 = vld [vmem:[%s2687_s3 + $0x70] sm:$0xff]  }
  0x6c   :  { %1007 = vmatprep.subr.bf16.mxu0 %v2010_v47  ;;  %1136 = vmatprep.subr.bf16.mxu1 %v2013_v48  ;;  %v2091_v47 = vld [vmem:[%s2687_s3 + $0xf0] sm:$0xff]  }
  0x6d   :  { %v2092_v48 = vld [vmem:[%s2687_s3 + $0x30] sm:$0xff]  }
  0x6f   :  { %1008 = vmatpush1.bf16.msra.mxu0 %v2008_v49  ;;  %1137 = vmatpush1.bf16.msra.mxu1 %v2011_v50  ;;  %v2093_v49 = vld [vmem:[%s2687_s3 + $0xb0] sm:$0xff]   ;;  %v2094_v50 = vld [vmem:[%s2687_s3 + $0x78] sm:$0xff]  }
  0x70   :  { %1009 = vmatprep.subr.bf16.mxu0 %v2016_v51  ;;  %1138 = vmatprep.subr.bf16.mxu1 %v2019_v52  ;;  %v2095_v51 = vld [vmem:[%s2687_s3 + $0xf8] sm:$0xff]  }
  0x71   :  { %v2096_v52 = vld [vmem:[%s2687_s3 + $0x38] sm:$0xff]  }
  0x73   :  { %1010 = vmatpush1.bf16.msra.mxu0 %v2014_v53  ;;  %1139 = vmatpush1.bf16.msra.mxu1 %v2017_v54  ;;  %v2097_v53 = vld [vmem:[%s2687_s3 + $0xb8] sm:$0xff]   ;;  %v173_v54 = vlaneseq }
  0x74   :  { %1011 = vmatprep.subr.bf16.mxu0 %v2022_v55  ;;  %1140 = vmatprep.subr.bf16.mxu1 %v2025_v56 }
  0x75   :  { %v174_v55 = vshrl.u32 %v173_v54, 7 }
  0x77   :  { %1012 = vmatpush1.bf16.msra.mxu0 %v2020_v57  ;;  %1141 = vmatpush1.bf16.msra.mxu1 %v2023_v58  ;;  %v175_v56 = vsub.s32 0, %v174_v55  ;;  %v183_v57 = vsub.s32 2, %v174_v55  ;;  %v171_v58 = vld [vmem:[%s2688_s2] sm:$0xf] }
  0x78   :  { %1013 = vmatprep.subr.bf16.mxu0 %v2028_v59  ;;  %1142 = vmatprep.subr.bf16.mxu1 %v2031_v60  ;;  %v179_v59 = vsub.s32 1, %v174_v55  ;;  %v187_v60 = vsub.s32 3, %v174_v55 }
  0x7b   :  { %1014 = vmatpush1.bf16.msra.mxu0 %v2026_v61  ;;  %1143 = vmatpush1.bf16.msra.mxu1 %v2029_v62  ;;  %v176_v61 = vrot.slane %v171_v58, %v175_v56  ;;  %v184_v62 = vrot.slane %v171_v58, %v183_v57 }
  0x7c   :  { %1015 = vmatprep.subr.bf16.mxu0 %v2034_v63  ;;  %1144 = vmatprep.subr.bf16.mxu1 %v2037_v0  ;;  %v180_v63 = vrot.slane %v171_v58, %v179_v59  ;;  %v188_v0 = vrot.slane %v171_v58, %v187_v60 }
  0x7f   :  { %1016 = vmatpush1.bf16.msra.mxu0 %v2032_v1  ;;  %1145 = vmatpush1.bf16.msra.mxu1 %v2035_v2 }
  0x80   :  { %1028 = vmatprep.subr.bf16.mxu0 %v2043_v3  ;;  %1157 = vmatprep.subr.bf16.mxu1 %v2046_v4 }
  0x82   :  { %1018 = vmatmul.mubr.bf16.vlgmr.msra.gmra.mrb[0].mxu0 %v2038_v5  ;;  %1147 = vmatmul.mubr.bf16.vlgmr.msra.gmra.mrb[0].mxu1 %v2038_v5 }
  0x83   :  { %1029 = vmatpush1.bf16.msra.mxu0 %v2041_v6  ;;  %1158 = vmatpush1.bf16.msra.mxu1 %v2044_v7 }
  0x84   :  { %1030 = vmatprep.subr.bf16.mxu0 %v2049_v8  ;;  %1159 = vmatprep.subr.bf16.mxu1 %v2052_v9 }
  0x85   :  { %1060 = vmatprep.mubr.bf16.mxu0 %v2098_v14  ;;  %1189 = vmatprep.mubr.bf16.mxu1 %v2098_v14 }
  0x87   :  { %1031 = vmatpush1.bf16.msra.mxu0 %v2047_v10  ;;  %1160 = vmatpush1.bf16.msra.mxu1 %v2050_v11 }
  0x88   :  { %1032 = vmatprep.subr.bf16.mxu0 %v2055_v12  ;;  %1161 = vmatprep.subr.bf16.mxu1 %v2058_v13 }
  0x8b   :  { %1033 = vmatpush1.bf16.msra.mxu0 %v2053_v15  ;;  %1162 = vmatpush1.bf16.msra.mxu1 %v2056_v16 }
  0x8c   :  { %1034 = vmatprep.subr.bf16.mxu0 %v2061_v17  ;;  %1163 = vmatprep.subr.bf16.mxu1 %v2064_v18 }
  0x8f   :  { %1035 = vmatpush1.bf16.msra.mxu0 %v2059_v19  ;;  %1164 = vmatpush1.bf16.msra.mxu1 %v2062_v20 }
  0x90   :  { %1771 = vmatprep.subr.bf16.mxu0 %v2066_v21  ;;  %1793 = vmatprep.subr.bf16.mxu1 %v2067_v22 }
  0x92   :  { %1736 = vmatmul.mubr.msk.bf16.vlgmr.msra.gmra.mrb[0].mxu0 %vm938_vm0, %v2065_v23  ;;  %1737 = vmatmul.mubr.msk.bf16.vlgmr.msra.gmra.mrb[0].mxu1 %vm938_vm0, %v2065_v23 }
  0x93   :  { %1772 = vmatpush3.bf16.msra.mxu0 %v2068_v24  ;;  %1794 = vmatpush3.bf16.msra.mxu1 %v2069_v25 }
  0x94   :  { %1773 = vmatprep.subr.bf16.mxu0 %v2070_v26  ;;  %1795 = vmatprep.subr.bf16.mxu1 %v2071_v27 }
  0x97   :  { %1774 = vmatpush3.bf16.msra.mxu0 %v2072_v28  ;;  %1796 = vmatpush3.bf16.msra.mxu1 %v2073_v29  ;;  %v2099_v29 = vmov 6  }
  0x98   :  { %1775 = vmatprep.subr.bf16.mxu0 %v2074_v30  ;;  %1797 = vmatprep.subr.bf16.mxu1 %v2075_v31 }
  0x99   :  { %1841 = vset.pattern.permute.xlu1 %v2099_v29  ;;  %1842 = vset.pattern.permute.xlu0 %v2099_v29 }
  0x9b   :  { %1776 = vmatpush3.bf16.msra.mxu0 %v2076_v32  ;;  %1798 = vmatpush3.bf16.msra.mxu1 %v2077_v33  ;;  %v1738_v32 = vld [vmem:[%s2689_s4] ss:$0 sm:$0xff] }
  0x9c   :  { %1777 = vmatprep.subr.bf16.mxu0 %v2078_v34  ;;  %1799 = vmatprep.subr.bf16.mxu1 %v2079_v35 }
  0x9f   :  { %1778 = vmatpush3.bf16.msra.mxu0 %v2080_v36  ;;  %1800 = vmatpush3.bf16.msra.mxu1 %v2081_v37 }
  0xa0   :  { %1779 = vmatprep.subr.bf16.mxu0 %v2082_v38  ;;  %1801 = vmatprep.subr.bf16.mxu1 %v2083_v39 }
  0xa3   :  { %1780 = vmatpush3.bf16.msra.mxu0 %v2084_v40  ;;  %1802 = vmatpush3.bf16.msra.mxu1 %v2085_v41 }
  0xa4   :  { %1781 = vmatprep.subr.bf16.mxu0 %v2086_v42  ;;  %1803 = vmatprep.subr.bf16.mxu1 %v2087_v43 }
  0xa7   :  { %1782 = vmatpush3.bf16.msra.mxu0 %v2088_v44  ;;  %1804 = vmatpush3.bf16.msra.mxu1 %v2089_v45 }
  0xa8   :  { %1783 = vmatprep.subr.bf16.mxu0 %v2090_v46  ;;  %1805 = vmatprep.subr.bf16.mxu1 %v2091_v47 }
  0xab   :  { %1784 = vmatpush3.bf16.msra.mxu0 %v2092_v48  ;;  %1806 = vmatpush3.bf16.msra.mxu1 %v2093_v49 }
  0xac   :  { %1785 = vmatprep.subr.bf16.mxu0 %v2094_v50  ;;  %1807 = vmatprep.subr.bf16.mxu1 %v2095_v51 }
  0xaf   :  { %1786 = vmatpush3.bf16.msra.mxu0 %v2096_v52  ;;  %1808 = vmatpush3.bf16.msra.mxu1 %v2097_v53 }
 0x165   :  { %v1062_v1 = vpop.f32.mrb[0].mxu0  ;;  %v1191_v2 = vpop.f32.mrb[0].mxu1 }
 0x166   :  { %v1815_v3 = vadd.f32 %v1062_v1, %v176_v61  ;;  %v1819_v4 = vadd.f32 %v1191_v2, %v184_v62  ;;  %v1064_v5 = vpop.f32.mrb[1].mxu0  ;;  %v1193_v6 = vpop.f32.mrb[1].mxu1 }
 0x167   :  { %v1816_v7 = vadd.f32 %v1064_v5, %v180_v63  ;;  %v1820_v8 = vadd.f32 %v1193_v6, %v188_v0  ;;  %v1066_v9 = vpop.f32.mrb[2].mxu0  ;;  %v1195_v10 = vpop.f32.mrb[2].mxu1 }
 0x168   :  { %v1817_v11 = vadd.f32 %v1066_v9, %v176_v61  ;;  %v1821_v12 = vadd.f32 %v1195_v10, %v184_v62  ;;  %v1068_v13 = vpop.f32.mrb[3].mxu0  ;;  %v1197_v14 = vpop.f32.mrb[3].mxu1  ;;  %v1200_v17 = vmax.f32 %v1815_v3, 0.0  ;;  %v1202_v18 = vmax.f32 %v1819_v4, 0.0 }
 0x169   :  { %v1818_v15 = vadd.f32 %v1068_v13, %v180_v63  ;;  %v1822_v16 = vadd.f32 %v1197_v14, %v188_v0  ;;  %v1201_v21 = vmax.f32 %v1816_v7, 0.0  ;;  %v1203_v22 = vmax.f32 %v1820_v8, 0.0 }
 0x16a   :  { %v1204_v19 = vmax.f32 %v1817_v11, 0.0  ;;  %v1206_v20 = vmax.f32 %v1821_v12, 0.0 }
 0x16b   :  { %v1205_v23 = vmax.f32 %v1818_v15, 0.0  ;;  %v1207_v24 = vmax.f32 %v1822_v16, 0.0 }
 0x16c   :  { %v1208_v25 = vpack.c.bf16 %v1204_v19, %v1200_v17  ;;  %v1210_v26 = vpack.c.bf16 %v1206_v20, %v1202_v18 }
 0x16d   :  { %v1209_v27 = vpack.c.bf16 %v1205_v23, %v1201_v21  ;;  %v1211_v28 = vpack.c.bf16 %v1207_v24, %v1203_v22 }
 0x16f   :  { %1507 = vmatprep.mubr.bf16.mxu0 %v1209_v27  ;;  %1548 = vmatprep.mubr.bf16.mxu1 %v1211_v28 }
 0x170   :  { %1508 = vmatmul.mubr.bf16.vlgmr.msra.gmra.mrb[4].mxu0 %v1208_v25  ;;  %1549 = vmatmul.mubr.bf16.vlgmr.msra.gmra.mrb[4].mxu1 %v1210_v26 }
 0x243   :  { %v1787_v30 = vpop.f32.mrb[4].mxu0  ;;  %v1809_v31 = vpop.f32.mrb[4].mxu1 }
 0x244   :  { %v1788_v33 = vpop.f32.mrb[5].mxu0  ;;  %v1810_v34 = vpop.f32.mrb[5].mxu1 }
 0x245   :  { %v1789_v35 = vadd.f32 %v1788_v33, %v1787_v30  ;;  %v1811_v36 = vadd.f32 %v1810_v34, %v1809_v31  ;;  %v1790_v37 = vpop.f32.mrb[6].mxu0  ;;  %v1812_v38 = vpop.f32.mrb[6].mxu1 }
 0x246   :  { %v1791_v39 = vpop.f32.mrb[7].mxu0  ;;  %v1813_v40 = vpop.f32.mrb[7].mxu1 }
 0x247   :  { %v1510_v41 = vadd.f32 %v1789_v35, %v1738_v32  ;;  %v1792_v42 = vadd.f32 %v1791_v39, %v1790_v37  ;;  %v1814_v43 = vadd.f32 %v1813_v40, %v1812_v38 }
 0x249   :  { %v1551_v44 = vadd.f32 %v1811_v36, %v1510_v41  ;;  %v1513_v45 = vadd.f32 %v1792_v42, %v1738_v32 }
 0x24b   :  { %v1554_v46 = vadd.f32 %v1814_v43, %v1513_v45  ;;  %1569 = vperm.xlu1 %1841, %v1551_v44   ;;  %v1558_v47 = vsel %vm1557_vm1, %v1551_v44, 0.0 }
 0x24c   :  { %1559 = vadd.xlane.f32.xlu0 %v1558_v47 }
 0x24d   :  { %v1561_v48 = vsel %vm1557_vm1, %v1554_v46, 0.0 }
 0x24f   :  { %1574 = vperm.xlu1 %1841, %v1554_v46  }
 0x250   :  { %1562 = vadd.xlane.f32.xlu0 %v1561_v48 }
 0x2ca   :  { %v1570_v49 = vpop.permute.xlu1 %1569 }
 0x2cb   :  { %v1577_v51 = vadd.f32 %v1570_v49, %v1551_v44 }
 0x2ce   :  { %v1575_v53 = vpop.permute.xlu1 %1574 }
 0x2cf   :  { %v1578_v56 = vadd.f32 %v1575_v53, %v1554_v46 }
 0x2d9   :  { %v1560_v50 = vpop.xlane.xlu0 %1559 }
 0x2da   :  { %v1565_v52 = vmul.f32 0.16666667, %v1560_v50 }
 0x2dc   :  { %v1579_v54 = vsub.f32 %v1577_v51, %v1565_v52 }
 0x2dd   :  { %v1563_v55 = vpop.xlane.xlu0 %1562 }
 0x2de   :  { %1581 = vst [vmem:[%s2690_s5] sm:$0xff] %v1579_v54  ;;  %v1566_v57 = vmul.f32 0.16666667, %v1563_v55 }
 0x2e0   :  { %v1580_v58 = vsub.f32 %v1578_v56, %v1566_v57 }
 0x2e2   :  { %1582 = vst [vmem:[%s2690_s5 + $0x8] sm:$0xff] %v1580_v58 }

</bundles_post_ra>
